<compile_context>
chip_gen: v7x
topology: tpu7x:2x2x1
jax: 0.10.0
libtpu: 0.0.40
codegen_flags: <defaults>
</compile_context>

<pallas_src>
import functools
import math

import jax
import jax.numpy as jnp
from jax.experimental import pallas as pl
from jax.experimental.pallas import tpu as pltpu


# ----------------------------- Pallas kernel -------------------------------


def _encoder_stack_kernel(
    x_ref,        # (bt, S, D)  f32  input tokens for this batch tile
    in_w_ref,     # (1, D, 3D)  bf16 in_proj weight, pre-transposed, Q pre-scaled
    in_b_ref,     # (1, 1, 3D)  f32  in_proj bias, Q pre-scaled
    out_w_ref,    # (1, D, D)   bf16 out_proj weight, pre-transposed
    out_b_ref,    # (1, 1, D)   f32
    w1_ref,       # (1, D, FF)  bf16 linear1 weight, pre-transposed
    b1_ref,       # (1, 1, FF)  f32
    w2_ref,       # (1, FF, D)  bf16 linear2 weight, pre-transposed
    b2_ref,       # (1, 1, D)   f32
    ln1_w_ref,    # (1, 1, D)   f32
    ln1_b_ref,    # (1, 1, D)   f32
    ln2_w_ref,    # (1, 1, D)   f32
    ln2_b_ref,    # (1, 1, D)   f32
    o_ref,        # (bt, S, D)  f32  output; doubles as the resident activation
    *,
    nhead: int,
    d_model: int,
):
    D = d_model
    hd = D // nhead
    bt, S, _ = x_ref.shape
    layer = pl.program_id(1)
    bf16 = jnp.bfloat16

    # Load tokens once per batch tile; the output block (constant index across
    # the layer axis) stays resident in VMEM and carries the activation.
    @pl.when(layer == 0)
    def _():
        o_ref[...] = x_ref[...]

    x = o_ref[...].reshape(bt * S, D)          # (T, D) f32, T = bt * S
    x_bf = x.astype(bf16)

    # ---- Multi-head self attention (per sequence, no mask) -----------------
    # Fused QKV projection; Q columns already carry the 1/sqrt(hd) scale.
    qkv = jnp.dot(x_bf, in_w_ref[0], preferred_element_type=jnp.float32)
    qkv = (qkv + in_b_ref[0]).reshape(bt, S, 3 * D)           # f32

    ctx_heads = []
    for h in range(nhead):
        q = qkv[:, :, h * hd:(h + 1) * hd].astype(bf16)               # (bt,S,hd)
        k = qkv[:, :, D + h * hd:D + (h + 1) * hd].astype(bf16)       # (bt,S,hd)
        v = qkv[:, :, 2 * D + h * hd:2 * D + (h + 1) * hd].astype(bf16)
        # scores (bt, S, S): bf16 MXU operands, f32 accumulation.
        s = jax.lax.dot_general(q, k, (((2,), (2,)), ((0,), (0,))),
                                preferred_element_type=jnp.float32)
        s = s - jnp.max(s, axis=-1, keepdims=True)
        p = jnp.exp(s)                                                 # f32
        p = p * pl.reciprocal(jnp.sum(p, axis=-1, keepdims=True), approx=True)
        ctx_heads.append(
            jax.lax.dot_general(p.astype(bf16), v, (((2,), (1,)), ((0,), (0,))),
                                preferred_element_type=jnp.float32).astype(bf16))

    # Heads concatenated in registers (bf16); ONE out-projection matmul.
    ctx = jnp.concatenate(ctx_heads, axis=-1).reshape(bt * S, D)       # bf16
    attn = jnp.dot(ctx, out_w_ref[0],
                   preferred_element_type=jnp.float32) + out_b_ref[0]  # (T, D) f32

    def layer_norm(z, w, b):
        mu = jnp.mean(z, axis=-1, keepdims=True)
        var = jnp.mean((z - mu) ** 2, axis=-1, keepdims=True)
        return (z - mu) * jax.lax.rsqrt(var + 1e-5) * w + b

    # residual + LayerNorm1 (f32)
    x1 = layer_norm(x + attn, ln1_w_ref[0], ln1_b_ref[0])

    # ---- Feed-forward -------------------------------------------------------
    h1 = jnp.maximum(
        jnp.dot(x1.astype(bf16), w1_ref[0],
                preferred_element_type=jnp.float32) + b1_ref[0], 0.0)
    ff = jnp.dot(h1.astype(bf16), w2_ref[0],
                 preferred_element_type=jnp.float32) + b2_ref[0]

    # residual + LayerNorm2 (f32)
    x2 = layer_norm(x1 + ff, ln2_w_ref[0], ln2_b_ref[0])

    o_ref[...] = x2.reshape(bt, S, D)


# ----------------------------- Wrapper --------------------------------------


def init_stacked_params(key, num_layers, d_model, dim_feedforward, nhead):
    """Synthetic per-layer parameters, stacked on a leading layer axis, stored
    pre-transposed (x @ W layout); matmul weights in bf16.  The attention
    scale 1/sqrt(head_dim) is folded into the Q third of in_proj."""
    D, FF, L = d_model, dim_feedforward, num_layers
    hd = D // nhead
    scale = 1.0 / math.sqrt(hd)
    ks = jax.random.split(key, 4)
    f32, bf16 = jnp.float32, jnp.bfloat16

    in_w_t = 0.02 * jax.random.normal(ks[0], (L, D, 3 * D), f32)
    in_w_t = in_w_t.at[:, :, :D].multiply(scale)      # fold scale into Q weight
    in_w_t = in_w_t.astype(bf16)
    in_b = jnp.zeros((L, 1, 3 * D), f32)
    in_b = in_b.at[:, :, :D].multiply(scale)          # fold scale into Q bias

    out_w_t = (0.02 * jax.random.normal(ks[1], (L, D, D), f32)).astype(bf16)
    out_b = jnp.zeros((L, 1, D), f32)
    w1_t = (0.02 * jax.random.normal(ks[2], (L, D, FF), f32)).astype(bf16)
    b1 = jnp.zeros((L, 1, FF), f32)
    w2_t = (0.02 * jax.random.normal(ks[3], (L, FF, D), f32)).astype(bf16)
    b2 = jnp.zeros((L, 1, D), f32)
    ln1_w = jnp.ones((L, 1, D), f32)
    ln1_b = jnp.zeros((L, 1, D), f32)
    ln2_w = jnp.ones((L, 1, D), f32)
    ln2_b = jnp.zeros((L, 1, D), f32)
    return (in_w_t, in_b, out_w_t, out_b, w1_t, b1, w2_t, b2,
            ln1_w, ln1_b, ln2_w, ln2_b)


def transformer_encoder(src, stacked_params, *, nhead, batch_tile=1):
    """src: (S, B, D) float32 (PyTorch batch_first=False layout)."""
    S, B, D = src.shape
    L = stacked_params[0].shape[0]
    assert D % nhead == 0, "d_model must be divisible by nhead"
    assert B % batch_tile == 0, "batch must be divisible by batch_tile"
    bt = batch_tile

    # ONE transpose (amortized over all L layers): per-sequence attention
    # needs each program to own whole sequences, i.e. (B, S, D).
    x = jnp.transpose(src, (1, 0, 2))

    kernel = functools.partial(_encoder_stack_kernel, nhead=nhead, d_model=D)

    in_specs = [pl.BlockSpec((bt, S, D), lambda b, l: (b, 0, 0))]
    in_specs += [pl.BlockSpec((1,) + p.shape[1:], lambda b, l: (l, 0, 0))
                 for p in stacked_params]
    out_specs = pl.BlockSpec((bt, S, D), lambda b, l: (b, 0, 0))

    out = pl.pallas_call(
        kernel,
        grid=(B // bt, L),                      # (parallel batch tiles, layers)
        in_specs=in_specs,
        out_specs=out_specs,
        out_shape=jax.ShapeDtypeStruct((B, S, D), jnp.float32),
        compiler_params=pltpu.CompilerParams(
            dimension_semantics=("parallel", "arbitrary"),
            # <= ~56 MiB keeps v7x (64 MiB VMEM/TC) safe; raise toward
            # ~100 MiB on v5e/v6e if shapes scale.
            vmem_limit_bytes=48 * 1024 * 1024,
        ),
    )(x, *stacked_params)

    return jnp.transpose(out, (1, 0, 2))


# ----------------------------- Main ------------------------------------------


if __name__ == "__main__":
    d_model = 32
    nhead = 4
    num_layers = 2
    dim_feedforward = 2048  # PyTorch default for TransformerEncoderLayer
    seq, batch = 8, 2

    key = jax.random.PRNGKey(0)
    k_in, k_par = jax.random.split(key)

    src = jax.random.normal(k_in, (seq, batch, d_model), jnp.float32)
    params = init_stacked_params(k_par, num_layers, d_model, dim_feedforward,
                                 nhead)

    out = transformer_encoder(src, params, nhead=nhead, batch_tile=1)
    out = jax.block_until_ready(out)
    assert out.shape == (seq, batch, d_model)
    assert jnp.all(jnp.isfinite(out))
    print("KERNEL_OK")
</pallas_src>

<mosaic_0001>
module attributes {stable_mosaic.version = 11 : i64} {
  func.func @_encoder_stack_kernel(%arg0: i32, %arg1: i32, %arg2: memref<1x8x32xf32, #tpu.memory_space<vmem>>, %arg3: memref<1x32x96xbf16, #tpu.memory_space<vmem>>, %arg4: memref<1x1x96xf32, #tpu.memory_space<vmem>>, %arg5: memref<1x32x32xbf16, #tpu.memory_space<vmem>>, %arg6: memref<1x1x32xf32, #tpu.memory_space<vmem>>, %arg7: memref<1x32x2048xbf16, #tpu.memory_space<vmem>>, %arg8: memref<1x1x2048xf32, #tpu.memory_space<vmem>>, %arg9: memref<1x2048x32xbf16, #tpu.memory_space<vmem>>, %arg10: memref<1x1x32xf32, #tpu.memory_space<vmem>>, %arg11: memref<1x1x32xf32, #tpu.memory_space<vmem>>, %arg12: memref<1x1x32xf32, #tpu.memory_space<vmem>>, %arg13: memref<1x1x32xf32, #tpu.memory_space<vmem>>, %arg14: memref<1x1x32xf32, #tpu.memory_space<vmem>>, %arg15: memref<1x8x32xf32, #tpu.memory_space<vmem>>) attributes {dimension_semantics = [#tpu.dimension_semantics<parallel>, #tpu.dimension_semantics<arbitrary>], iteration_bounds = array<i64: 2, 2>, scalar_prefetch = 0 : i64, scratch_operands = 0 : i64, tpu.core_type = #tpu.core_type<tc>, window_params = [{transform_indices = @transform_0, window_bounds = array<i64: 1, 8, 32>}, {transform_indices = @transform_1, window_bounds = array<i64: 1, 32, 96>}, {transform_indices = @transform_2, window_bounds = array<i64: 1, 1, 96>}, {transform_indices = @transform_3, window_bounds = array<i64: 1, 32, 32>}, {transform_indices = @transform_4, window_bounds = array<i64: 1, 1, 32>}, {transform_indices = @transform_5, window_bounds = array<i64: 1, 32, 2048>}, {transform_indices = @transform_6, window_bounds = array<i64: 1, 1, 2048>}, {transform_indices = @transform_7, window_bounds = array<i64: 1, 2048, 32>}, {transform_indices = @transform_8, window_bounds = array<i64: 1, 1, 32>}, {transform_indices = @transform_9, window_bounds = array<i64: 1, 1, 32>}, {transform_indices = @transform_10, window_bounds = array<i64: 1, 1, 32>}, {transform_indices = @transform_11, window_bounds = array<i64: 1, 1, 32>}, {transform_indices = @transform_12, window_bounds = array<i64: 1, 1, 32>}, {transform_indices = @transform_13, window_bounds = array<i64: 1, 8, 32>}]} {
    %c0_i32 = arith.constant 0 : i32
    %0 = arith.cmpi eq, %arg1, %c0_i32 : i32
    %1 = arith.extui %0 : i1 to i32
    %c0_i32_0 = arith.constant 0 : i32
    %2 = arith.cmpi ne, %1, %c0_i32_0 : i32
    scf.if %2 {
      %c0_72 = arith.constant 0 : index
      %c0_73 = arith.constant 0 : index
      %c0_74 = arith.constant 0 : index
      %177 = vector.load %arg2[%c0_72, %c0_73, %c0_74] : memref<1x8x32xf32, #tpu.memory_space<vmem>>, vector<1x8x32xf32>
      %c0_75 = arith.constant 0 : index
      %c0_76 = arith.constant 0 : index
      %c0_77 = arith.constant 0 : index
      %178 = vector.load %arg15[%c0_75, %c0_76, %c0_77] : memref<1x8x32xf32, #tpu.memory_space<vmem>>, vector<1x8x32xf32>
      tpu.vector_store %arg15[%c0_75, %c0_76, %c0_77], %177 {strides = array<i32>} : memref<1x8x32xf32, #tpu.memory_space<vmem>>, vector<1x8x32xf32>,
    } else {
    }
    %c0 = arith.constant 0 : index
    %c0_1 = arith.constant 0 : index
    %c0_2 = arith.constant 0 : index
    %3 = vector.load %arg15[%c0, %c0_1, %c0_2] : memref<1x8x32xf32, #tpu.memory_space<vmem>>, vector<1x8x32xf32>
    %4 = vector.shape_cast %3 : vector<1x8x32xf32> to vector<8x32xf32>
    %5 = arith.truncf %4 : vector<8x32xf32> to vector<8x32xbf16>
    %c0_3 = arith.constant 0 : index
    %c0_4 = arith.constant 0 : index
    %c0_5 = arith.constant 0 : index
    %6 = vector.load %arg3[%c0_3, %c0_4, %c0_5] : memref<1x32x96xbf16, #tpu.memory_space<vmem>>, vector<1x32x96xbf16>
    %7 = vector.shape_cast %6 : vector<1x32x96xbf16> to vector<32x96xbf16>
    %cst = arith.constant dense<0.000000e+00> : vector<8x96xf32>
    %8 = tpu.matmul %5, %7, %cst {dimension_numbers = #tpu.dot_dimension_numbers<[1], [0], [0], [1], [0, 0, 1, 1], [], []>} : vector<8x32xbf16>, vector<32x96xbf16>, vector<8x96xf32> -> vector<8x96xf32>
    %c0_6 = arith.constant 0 : index
    %c0_7 = arith.constant 0 : index
    %c0_8 = arith.constant 0 : index
    %9 = vector.load %arg4[%c0_6, %c0_7, %c0_8] : memref<1x1x96xf32, #tpu.memory_space<vmem>>, vector<1x1x96xf32>
    %10 = vector.shape_cast %9 : vector<1x1x96xf32> to vector<1x96xf32>
    %11 = vector.broadcast %10 : vector<1x96xf32> to vector<8x96xf32>
    %12 = arith.addf %8, %11 : vector<8x96xf32>
    %13 = vector.shape_cast %12 : vector<8x96xf32> to vector<1x8x96xf32>
    %14 = vector.extract_strided_slice %13 {offsets = [0, 0, 0], sizes = [1, 8, 8], strides = [1, 1, 1]} : vector<1x8x96xf32> to vector<1x8x8xf32>
    %15 = arith.truncf %14 : vector<1x8x8xf32> to vector<1x8x8xbf16>
    %16 = vector.extract_strided_slice %13 {offsets = [0, 0, 32], sizes = [1, 8, 8], strides = [1, 1, 1]} : vector<1x8x96xf32> to vector<1x8x8xf32>
    %17 = arith.truncf %16 : vector<1x8x8xf32> to vector<1x8x8xbf16>
    %18 = vector.extract_strided_slice %13 {offsets = [0, 0, 64], sizes = [1, 8, 8], strides = [1, 1, 1]} : vector<1x8x96xf32> to vector<1x8x8xf32>
    %19 = arith.truncf %18 : vector<1x8x8xf32> to vector<1x8x8xbf16>
    %cst_9 = arith.constant dense<0.000000e+00> : vector<1x8x8xf32>
    %20 = tpu.matmul %15, %17, %cst_9 {dimension_numbers = #tpu.dot_dimension_numbers<[2], [2], [1], [1], [0, 0, 0, 1, 1, 1], [0], [0]>} : vector<1x8x8xbf16>, vector<1x8x8xbf16>, vector<1x8x8xf32> -> vector<1x8x8xf32>
    %cst_10 = arith.constant dense<0xFF800000> : vector<1x8xf32>
    %21 = vector.multi_reduction <maximumf>, %20, %cst_10 [2] : vector<1x8x8xf32> to vector<1x8xf32>
    %22 = vector.shape_cast %21 : vector<1x8xf32> to vector<1x8x1xf32>
    %23 = vector.broadcast %22 : vector<1x8x1xf32> to vector<1x8x8xf32>
    %24 = arith.subf %20, %23 : vector<1x8x8xf32>
    %25 = math.exp %24 : vector<1x8x8xf32>
    %cst_11 = arith.constant dense<0.000000e+00> : vector<1x8xf32>
    %26 = vector.multi_reduction <add>, %25, %cst_11 [2] : vector<1x8x8xf32> to vector<1x8xf32>
    %27 = vector.shape_cast %26 : vector<1x8xf32> to vector<1x8x1xf32>
    %28 = tpu.reciprocal %27 {approx = true} : vector<1x8x1xf32> -> vector<1x8x1xf32>
    %29 = vector.broadcast %28 : vector<1x8x1xf32> to vector<1x8x8xf32>
    %30 = arith.mulf %25, %29 : vector<1x8x8xf32>
    %31 = arith.truncf %30 : vector<1x8x8xf32> to vector<1x8x8xbf16>
    %cst_12 = arith.constant dense<0.000000e+00> : vector<1x8x8xf32>
    %32 = tpu.matmul %31, %19, %cst_12 {dimension_numbers = #tpu.dot_dimension_numbers<[2], [1], [1], [2], [0, 0, 0, 1, 1, 2], [0], [0]>} : vector<1x8x8xbf16>, vector<1x8x8xbf16>, vector<1x8x8xf32> -> vector<1x8x8xf32>
    %33 = arith.truncf %32 : vector<1x8x8xf32> to vector<1x8x8xbf16>
    %34 = vector.extract_strided_slice %13 {offsets = [0, 0, 8], sizes = [1, 8, 8], strides = [1, 1, 1]} : vector<1x8x96xf32> to vector<1x8x8xf32>
    %35 = arith.truncf %34 : vector<1x8x8xf32> to vector<1x8x8xbf16>
    %36 = vector.extract_strided_slice %13 {offsets = [0, 0, 40], sizes = [1, 8, 8], strides = [1, 1, 1]} : vector<1x8x96xf32> to vector<1x8x8xf32>
    %37 = arith.truncf %36 : vector<1x8x8xf32> to vector<1x8x8xbf16>
    %38 = vector.extract_strided_slice %13 {offsets = [0, 0, 72], sizes = [1, 8, 8], strides = [1, 1, 1]} : vector<1x8x96xf32> to vector<1x8x8xf32>
    %39 = arith.truncf %38 : vector<1x8x8xf32> to vector<1x8x8xbf16>
    %cst_13 = arith.constant dense<0.000000e+00> : vector<1x8x8xf32>
    %40 = tpu.matmul %35, %37, %cst_13 {dimension_numbers = #tpu.dot_dimension_numbers<[2], [2], [1], [1], [0, 0, 0, 1, 1, 1], [0], [0]>} : vector<1x8x8xbf16>, vector<1x8x8xbf16>, vector<1x8x8xf32> -> vector<1x8x8xf32>
    %cst_14 = arith.constant dense<0xFF800000> : vector<1x8xf32>
    %41 = vector.multi_reduction <maximumf>, %40, %cst_14 [2] : vector<1x8x8xf32> to vector<1x8xf32>
    %42 = vector.shape_cast %41 : vector<1x8xf32> to vector<1x8x1xf32>
    %43 = vector.broadcast %42 : vector<1x8x1xf32> to vector<1x8x8xf32>
    %44 = arith.subf %40, %43 : vector<1x8x8xf32>
    %45 = math.exp %44 : vector<1x8x8xf32>
    %cst_15 = arith.constant dense<0.000000e+00> : vector<1x8xf32>
    %46 = vector.multi_reduction <add>, %45, %cst_15 [2] : vector<1x8x8xf32> to vector<1x8xf32>
    %47 = vector.shape_cast %46 : vector<1x8xf32> to vector<1x8x1xf32>
    %48 = tpu.reciprocal %47 {approx = true} : vector<1x8x1xf32> -> vector<1x8x1xf32>
    %49 = vector.broadcast %48 : vector<1x8x1xf32> to vector<1x8x8xf32>
    %50 = arith.mulf %45, %49 : vector<1x8x8xf32>
    %51 = arith.truncf %50 : vector<1x8x8xf32> to vector<1x8x8xbf16>
    %cst_16 = arith.constant dense<0.000000e+00> : vector<1x8x8xf32>
    %52 = tpu.matmul %51, %39, %cst_16 {dimension_numbers = #tpu.dot_dimension_numbers<[2], [1], [1], [2], [0, 0, 0, 1, 1, 2], [0], [0]>} : vector<1x8x8xbf16>, vector<1x8x8xbf16>, vector<1x8x8xf32> -> vector<1x8x8xf32>
    %53 = arith.truncf %52 : vector<1x8x8xf32> to vector<1x8x8xbf16>
    %54 = vector.extract_strided_slice %13 {offsets = [0, 0, 16], sizes = [1, 8, 8], strides = [1, 1, 1]} : vector<1x8x96xf32> to vector<1x8x8xf32>
    %55 = arith.truncf %54 : vector<1x8x8xf32> to vector<1x8x8xbf16>
    %56 = vector.extract_strided_slice %13 {offsets = [0, 0, 48], sizes = [1, 8, 8], strides = [1, 1, 1]} : vector<1x8x96xf32> to vector<1x8x8xf32>
    %57 = arith.truncf %56 : vector<1x8x8xf32> to vector<1x8x8xbf16>
    %58 = vector.extract_strided_slice %13 {offsets = [0, 0, 80], sizes = [1, 8, 8], strides = [1, 1, 1]} : vector<1x8x96xf32> to vector<1x8x8xf32>
    %59 = arith.truncf %58 : vector<1x8x8xf32> to vector<1x8x8xbf16>
    %cst_17 = arith.constant dense<0.000000e+00> : vector<1x8x8xf32>
    %60 = tpu.matmul %55, %57, %cst_17 {dimension_numbers = #tpu.dot_dimension_numbers<[2], [2], [1], [1], [0, 0, 0, 1, 1, 1], [0], [0]>} : vector<1x8x8xbf16>, vector<1x8x8xbf16>, vector<1x8x8xf32> -> vector<1x8x8xf32>
    %cst_18 = arith.constant dense<0xFF800000> : vector<1x8xf32>
    %61 = vector.multi_reduction <maximumf>, %60, %cst_18 [2] : vector<1x8x8xf32> to vector<1x8xf32>
    %62 = vector.shape_cast %61 : vector<1x8xf32> to vector<1x8x1xf32>
    %63 = vector.broadcast %62 : vector<1x8x1xf32> to vector<1x8x8xf32>
    %64 = arith.subf %60, %63 : vector<1x8x8xf32>
    %65 = math.exp %64 : vector<1x8x8xf32>
    %cst_19 = arith.constant dense<0.000000e+00> : vector<1x8xf32>
    %66 = vector.multi_reduction <add>, %65, %cst_19 [2] : vector<1x8x8xf32> to vector<1x8xf32>
    %67 = vector.shape_cast %66 : vector<1x8xf32> to vector<1x8x1xf32>
    %68 = tpu.reciprocal %67 {approx = true} : vector<1x8x1xf32> -> vector<1x8x1xf32>
    %69 = vector.broadcast %68 : vector<1x8x1xf32> to vector<1x8x8xf32>
    %70 = arith.mulf %65, %69 : vector<1x8x8xf32>
    %71 = arith.truncf %70 : vector<1x8x8xf32> to vector<1x8x8xbf16>
    %cst_20 = arith.constant dense<0.000000e+00> : vector<1x8x8xf32>
    %72 = tpu.matmul %71, %59, %cst_20 {dimension_numbers = #tpu.dot_dimension_numbers<[2], [1], [1], [2], [0, 0, 0, 1, 1, 2], [0], [0]>} : vector<1x8x8xbf16>, vector<1x8x8xbf16>, vector<1x8x8xf32> -> vector<1x8x8xf32>
    %73 = arith.truncf %72 : vector<1x8x8xf32> to vector<1x8x8xbf16>
    %74 = vector.extract_strided_slice %13 {offsets = [0, 0, 24], sizes = [1, 8, 8], strides = [1, 1, 1]} : vector<1x8x96xf32> to vector<1x8x8xf32>
    %75 = arith.truncf %74 : vector<1x8x8xf32> to vector<1x8x8xbf16>
    %76 = vector.extract_strided_slice %13 {offsets = [0, 0, 56], sizes = [1, 8, 8], strides = [1, 1, 1]} : vector<1x8x96xf32> to vector<1x8x8xf32>
    %77 = arith.truncf %76 : vector<1x8x8xf32> to vector<1x8x8xbf16>
    %78 = vector.extract_strided_slice %13 {offsets = [0, 0, 88], sizes = [1, 8, 8], strides = [1, 1, 1]} : vector<1x8x96xf32> to vector<1x8x8xf32>
    %79 = arith.truncf %78 : vector<1x8x8xf32> to vector<1x8x8xbf16>
    %cst_21 = arith.constant dense<0.000000e+00> : vector<1x8x8xf32>
    %80 = tpu.matmul %75, %77, %cst_21 {dimension_numbers = #tpu.dot_dimension_numbers<[2], [2], [1], [1], [0, 0, 0, 1, 1, 1], [0], [0]>} : vector<1x8x8xbf16>, vector<1x8x8xbf16>, vector<1x8x8xf32> -> vector<1x8x8xf32>
    %cst_22 = arith.constant dense<0xFF800000> : vector<1x8xf32>
    %81 = vector.multi_reduction <maximumf>, %80, %cst_22 [2] : vector<1x8x8xf32> to vector<1x8xf32>
    %82 = vector.shape_cast %81 : vector<1x8xf32> to vector<1x8x1xf32>
    %83 = vector.broadcast %82 : vector<1x8x1xf32> to vector<1x8x8xf32>
    %84 = arith.subf %80, %83 : vector<1x8x8xf32>
    %85 = math.exp %84 : vector<1x8x8xf32>
    %cst_23 = arith.constant dense<0.000000e+00> : vector<1x8xf32>
    %86 = vector.multi_reduction <add>, %85, %cst_23 [2] : vector<1x8x8xf32> to vector<1x8xf32>
    %87 = vector.shape_cast %86 : vector<1x8xf32> to vector<1x8x1xf32>
    %88 = tpu.reciprocal %87 {approx = true} : vector<1x8x1xf32> -> vector<1x8x1xf32>
    %89 = vector.broadcast %88 : vector<1x8x1xf32> to vector<1x8x8xf32>
    %90 = arith.mulf %85, %89 : vector<1x8x8xf32>
    %91 = arith.truncf %90 : vector<1x8x8xf32> to vector<1x8x8xbf16>
    %cst_24 = arith.constant dense<0.000000e+00> : vector<1x8x8xf32>
    %92 = tpu.matmul %91, %79, %cst_24 {dimension_numbers = #tpu.dot_dimension_numbers<[2], [1], [1], [2], [0, 0, 0, 1, 1, 2], [0], [0]>} : vector<1x8x8xbf16>, vector<1x8x8xbf16>, vector<1x8x8xf32> -> vector<1x8x8xf32>
    %93 = arith.truncf %92 : vector<1x8x8xf32> to vector<1x8x8xbf16>
    %94 = tpu.concatenate %33, %53, %73, %93 in 2 : vector<1x8x8xbf16>, vector<1x8x8xbf16>, vector<1x8x8xbf16>, vector<1x8x8xbf16> -> vector<1x8x32xbf16>
    %95 = vector.shape_cast %94 : vector<1x8x32xbf16> to vector<8x32xbf16>
    %c0_25 = arith.constant 0 : index
    %c0_26 = arith.constant 0 : index
    %c0_27 = arith.constant 0 : index
    %96 = vector.load %arg5[%c0_25, %c0_26, %c0_27] : memref<1x32x32xbf16, #tpu.memory_space<vmem>>, vector<1x32x32xbf16>
    %97 = vector.shape_cast %96 : vector<1x32x32xbf16> to vector<32x32xbf16>
    %cst_28 = arith.constant dense<0.000000e+00> : vector<8x32xf32>
    %98 = tpu.matmul %95, %97, %cst_28 {dimension_numbers = #tpu.dot_dimension_numbers<[1], [0], [0], [1], [0, 0, 1, 1], [], []>} : vector<8x32xbf16>, vector<32x32xbf16>, vector<8x32xf32> -> vector<8x32xf32>
    %c0_29 = arith.constant 0 : index
    %c0_30 = arith.constant 0 : index
    %c0_31 = arith.constant 0 : index
    %99 = vector.load %arg6[%c0_29, %c0_30, %c0_31] : memref<1x1x32xf32, #tpu.memory_space<vmem>>, vector<1x1x32xf32>
    %100 = vector.shape_cast %99 : vector<1x1x32xf32> to vector<1x32xf32>
    %101 = vector.broadcast %100 : vector<1x32xf32> to vector<8x32xf32>
    %102 = arith.addf %98, %101 : vector<8x32xf32>
    %103 = arith.addf %4, %102 : vector<8x32xf32>
    %c0_32 = arith.constant 0 : index
    %c0_33 = arith.constant 0 : index
    %c0_34 = arith.constant 0 : index
    %104 = vector.load %arg11[%c0_32, %c0_33, %c0_34] : memref<1x1x32xf32, #tpu.memory_space<vmem>>, vector<1x1x32xf32>
    %105 = vector.shape_cast %104 : vector<1x1x32xf32> to vector<1x32xf32>
    %c0_35 = arith.constant 0 : index
    %c0_36 = arith.constant 0 : index
    %c0_37 = arith.constant 0 : index
    %106 = vector.load %arg12[%c0_35, %c0_36, %c0_37] : memref<1x1x32xf32, #tpu.memory_space<vmem>>, vector<1x1x32xf32>
    %107 = vector.shape_cast %106 : vector<1x1x32xf32> to vector<1x32xf32>
    %cst_38 = arith.constant dense<0.000000e+00> : vector<8xf32>
    %108 = vector.multi_reduction <add>, %103, %cst_38 [1] : vector<8x32xf32> to vector<8xf32>
    %109 = vector.shape_cast %108 : vector<8xf32> to vector<8x1xf32>
    %cst_39 = arith.constant 3.200000e+01 : f32
    %110 = vector.broadcast %cst_39 : f32 to vector<8x1xf32>
    %111 = arith.divf %109, %110 : vector<8x1xf32>
    %112 = vector.broadcast %111 : vector<8x1xf32> to vector<8x32xf32>
    %113 = arith.subf %103, %112 : vector<8x32xf32>
    %114 = arith.mulf %113, %113 : vector<8x32xf32>
    %cst_40 = arith.constant dense<0.000000e+00> : vector<8xf32>
    %115 = vector.multi_reduction <add>, %114, %cst_40 [1] : vector<8x32xf32> to vector<8xf32>
    %116 = vector.shape_cast %115 : vector<8xf32> to vector<8x1xf32>
    %cst_41 = arith.constant 3.200000e+01 : f32
    %117 = vector.broadcast %cst_41 : f32 to vector<8x1xf32>
    %118 = arith.divf %116, %117 : vector<8x1xf32>
    %119 = vector.broadcast %111 : vector<8x1xf32> to vector<8x32xf32>
    %120 = arith.subf %103, %119 : vector<8x32xf32>
    %cst_42 = arith.constant 9.99999974E-6 : f32
    %121 = vector.broadcast %cst_42 : f32 to vector<8x1xf32>
    %122 = arith.addf %118, %121 : vector<8x1xf32>
    %123 = math.rsqrt %122 : vector<8x1xf32>
    %124 = vector.broadcast %123 : vector<8x1xf32> to vector<8x32xf32>
    %125 = arith.mulf %120, %124 : vector<8x32xf32>
    %126 = vector.broadcast %105 : vector<1x32xf32> to vector<8x32xf32>
    %127 = arith.mulf %125, %126 : vector<8x32xf32>
    %128 = vector.broadcast %107 : vector<1x32xf32> to vector<8x32xf32>
    %129 = arith.addf %127, %128 : vector<8x32xf32>
    %130 = arith.truncf %129 : vector<8x32xf32> to vector<8x32xbf16>
    %c0_43 = arith.constant 0 : index
    %c0_44 = arith.constant 0 : index
    %c0_45 = arith.constant 0 : index
    %131 = vector.load %arg7[%c0_43, %c0_44, %c0_45] : memref<1x32x2048xbf16, #tpu.memory_space<vmem>>, vector<1x32x2048xbf16>
    %132 = vector.shape_cast %131 : vector<1x32x2048xbf16> to vector<32x2048xbf16>
    %cst_46 = arith.constant dense<0.000000e+00> : vector<8x2048xf32>
    %133 = tpu.matmul %130, %132, %cst_46 {dimension_numbers = #tpu.dot_dimension_numbers<[1], [0], [0], [1], [0, 0, 1, 1], [], []>} : vector<8x32xbf16>, vector<32x2048xbf16>, vector<8x2048xf32> -> vector<8x2048xf32>
    %c0_47 = arith.constant 0 : index
    %c0_48 = arith.constant 0 : index
    %c0_49 = arith.constant 0 : index
    %134 = vector.load %arg8[%c0_47, %c0_48, %c0_49] : memref<1x1x2048xf32, #tpu.memory_space<vmem>>, vector<1x1x2048xf32>
    %135 = vector.shape_cast %134 : vector<1x1x2048xf32> to vector<1x2048xf32>
    %136 = vector.broadcast %135 : vector<1x2048xf32> to vector<8x2048xf32>
    %137 = arith.addf %133, %136 : vector<8x2048xf32>
    %cst_50 = arith.constant 0.000000e+00 : f32
    %138 = vector.broadcast %cst_50 : f32 to vector<8x2048xf32>
    %139 = arith.maximumf %137, %138 : vector<8x2048xf32>
    %140 = arith.truncf %139 : vector<8x2048xf32> to vector<8x2048xbf16>
    %c0_51 = arith.constant 0 : index
    %c0_52 = arith.constant 0 : index
    %c0_53 = arith.constant 0 : index
    %141 = vector.load %arg9[%c0_51, %c0_52, %c0_53] : memref<1x2048x32xbf16, #tpu.memory_space<vmem>>, vector<1x2048x32xbf16>
    %142 = vector.shape_cast %141 : vector<1x2048x32xbf16> to vector<2048x32xbf16>
    %cst_54 = arith.constant dense<0.000000e+00> : vector<8x32xf32>
    %143 = tpu.matmul %140, %142, %cst_54 {dimension_numbers = #tpu.dot_dimension_numbers<[1], [0], [0], [1], [0, 0, 1, 1], [], []>} : vector<8x2048xbf16>, vector<2048x32xbf16>, vector<8x32xf32> -> vector<8x32xf32>
    %c0_55 = arith.constant 0 : index
    %c0_56 = arith.constant 0 : index
    %c0_57 = arith.constant 0 : index
    %144 = vector.load %arg10[%c0_55, %c0_56, %c0_57] : memref<1x1x32xf32, #tpu.memory_space<vmem>>, vector<1x1x32xf32>
    %145 = vector.shape_cast %144 : vector<1x1x32xf32> to vector<1x32xf32>
    %146 = vector.broadcast %145 : vector<1x32xf32> to vector<8x32xf32>
    %147 = arith.addf %143, %146 : vector<8x32xf32>
    %148 = arith.addf %129, %147 : vector<8x32xf32>
    %c0_58 = arith.constant 0 : index
    %c0_59 = arith.constant 0 : index
    %c0_60 = arith.constant 0 : index
    %149 = vector.load %arg13[%c0_58, %c0_59, %c0_60] : memref<1x1x32xf32, #tpu.memory_space<vmem>>, vector<1x1x32xf32>
    %150 = vector.shape_cast %149 : vector<1x1x32xf32> to vector<1x32xf32>
    %c0_61 = arith.constant 0 : index
    %c0_62 = arith.constant 0 : index
    %c0_63 = arith.constant 0 : index
    %151 = vector.load %arg14[%c0_61, %c0_62, %c0_63] : memref<1x1x32xf32, #tpu.memory_space<vmem>>, vector<1x1x32xf32>
    %152 = vector.shape_cast %151 : vector<1x1x32xf32> to vector<1x32xf32>
    %cst_64 = arith.constant dense<0.000000e+00> : vector<8xf32>
    %153 = vector.multi_reduction <add>, %148, %cst_64 [1] : vector<8x32xf32> to vector<8xf32>
    %154 = vector.shape_cast %153 : vector<8xf32> to vector<8x1xf32>
    %cst_65 = arith.constant 3.200000e+01 : f32
    %155 = vector.broadcast %cst_65 : f32 to vector<8x1xf32>
    %156 = arith.divf %154, %155 : vector<8x1xf32>
    %157 = vector.broadcast %156 : vector<8x1xf32> to vector<8x32xf32>
    %158 = arith.subf %148, %157 : vector<8x32xf32>
    %159 = arith.mulf %158, %158 : vector<8x32xf32>
    %cst_66 = arith.constant dense<0.000000e+00> : vector<8xf32>
    %160 = vector.multi_reduction <add>, %159, %cst_66 [1] : vector<8x32xf32> to vector<8xf32>
    %161 = vector.shape_cast %160 : vector<8xf32> to vector<8x1xf32>
    %cst_67 = arith.constant 3.200000e+01 : f32
    %162 = vector.broadcast %cst_67 : f32 to vector<8x1xf32>
    %163 = arith.divf %161, %162 : vector<8x1xf32>
    %164 = vector.broadcast %156 : vector<8x1xf32> to vector<8x32xf32>
    %165 = arith.subf %148, %164 : vector<8x32xf32>
    %cst_68 = arith.constant 9.99999974E-6 : f32
    %166 = vector.broadcast %cst_68 : f32 to vector<8x1xf32>
    %167 = arith.addf %163, %166 : vector<8x1xf32>
    %168 = math.rsqrt %167 : vector<8x1xf32>
    %169 = vector.broadcast %168 : vector<8x1xf32> to vector<8x32xf32>
    %170 = arith.mulf %165, %169 : vector<8x32xf32>
    %171 = vector.broadcast %150 : vector<1x32xf32> to vector<8x32xf32>
    %172 = arith.mulf %170, %171 : vector<8x32xf32>
    %173 = vector.broadcast %152 : vector<1x32xf32> to vector<8x32xf32>
    %174 = arith.addf %172, %173 : vector<8x32xf32>
    %175 = vector.shape_cast %174 : vector<8x32xf32> to vector<1x8x32xf32>
    %c0_69 = arith.constant 0 : index
    %c0_70 = arith.constant 0 : index
    %c0_71 = arith.constant 0 : index
    %176 = vector.load %arg15[%c0_69, %c0_70, %c0_71] : memref<1x8x32xf32, #tpu.memory_space<vmem>>, vector<1x8x32xf32>
    tpu.vector_store %arg15[%c0_69, %c0_70, %c0_71], %175 {strides = array<i32>} : memref<1x8x32xf32, #tpu.memory_space<vmem>>, vector<1x8x32xf32>,
    return
  }
  func.func @transform_0(%arg0: i32, %arg1: i32) -> (i32, i32, i32) {
    %c0_i32 = arith.constant 0 : i32
    %c0_i32_0 = arith.constant 0 : i32
    %c0_i32_1 = arith.constant 0 : i32
    return %arg0, %c0_i32, %c0_i32_0 : i32, i32, i32
  }
  func.func @transform_1(%arg0: i32, %arg1: i32) -> (i32, i32, i32) {
    %c0_i32 = arith.constant 0 : i32
    %c0_i32_0 = arith.constant 0 : i32
    %c0_i32_1 = arith.constant 0 : i32
    return %arg1, %c0_i32, %c0_i32_0 : i32, i32, i32
  }
  func.func @transform_2(%arg0: i32, %arg1: i32) -> (i32, i32, i32) {
    %c0_i32 = arith.constant 0 : i32
    %c0_i32_0 = arith.constant 0 : i32
    %c0_i32_1 = arith.constant 0 : i32
    return %arg1, %c0_i32, %c0_i32_0 : i32, i32, i32
  }
  func.func @transform_3(%arg0: i32, %arg1: i32) -> (i32, i32, i32) {
    %c0_i32 = arith.constant 0 : i32
    %c0_i32_0 = arith.constant 0 : i32
    %c0_i32_1 = arith.constant 0 : i32
    return %arg1, %c0_i32, %c0_i32_0 : i32, i32, i32
  }
  func.func @transform_4(%arg0: i32, %arg1: i32) -> (i32, i32, i32) {
    %c0_i32 = arith.constant 0 : i32
    %c0_i32_0 = arith.constant 0 : i32
    %c0_i32_1 = arith.constant 0 : i32
    return %arg1, %c0_i32, %c0_i32_0 : i32, i32, i32
  }
  func.func @transform_5(%arg0: i32, %arg1: i32) -> (i32, i32, i32) {
    %c0_i32 = arith.constant 0 : i32
    %c0_i32_0 = arith.constant 0 : i32
    %c0_i32_1 = arith.constant 0 : i32
    return %arg1, %c0_i32, %c0_i32_0 : i32, i32, i32
  }
  func.func @transform_6(%arg0: i32, %arg1: i32) -> (i32, i32, i32) {
    %c0_i32 = arith.constant 0 : i32
    %c0_i32_0 = arith.constant 0 : i32
    %c0_i32_1 = arith.constant 0 : i32
    return %arg1, %c0_i32, %c0_i32_0 : i32, i32, i32
  }
  func.func @transform_7(%arg0: i32, %arg1: i32) -> (i32, i32, i32) {
    %c0_i32 = arith.constant 0 : i32
    %c0_i32_0 = arith.constant 0 : i32
    %c0_i32_1 = arith.constant 0 : i32
    return %arg1, %c0_i32, %c0_i32_0 : i32, i32, i32
  }
  func.func @transform_8(%arg0: i32, %arg1: i32) -> (i32, i32, i32) {
    %c0_i32 = arith.constant 0 : i32
    %c0_i32_0 = arith.constant 0 : i32
    %c0_i32_1 = arith.constant 0 : i32
    return %arg1, %c0_i32, %c0_i32_0 : i32, i32, i32
  }
  func.func @transform_9(%arg0: i32, %arg1: i32) -> (i32, i32, i32) {
    %c0_i32 = arith.constant 0 : i32
    %c0_i32_0 = arith.constant 0 : i32
    %c0_i32_1 = arith.constant 0 : i32
    return %arg1, %c0_i32, %c0_i32_0 : i32, i32, i32
  }
  func.func @transform_10(%arg0: i32, %arg1: i32) -> (i32, i32, i32) {
    %c0_i32 = arith.constant 0 : i32
    %c0_i32_0 = arith.constant 0 : i32
    %c0_i32_1 = arith.constant 0 : i32
    return %arg1, %c0_i32, %c0_i32_0 : i32, i32, i32
  }
  func.func @transform_11(%arg0: i32, %arg1: i32) -> (i32, i32, i32) {
    %c0_i32 = arith.constant 0 : i32
    %c0_i32_0 = arith.constant 0 : i32
    %c0_i32_1 = arith.constant 0 : i32
    return %arg1, %c0_i32, %c0_i32_0 : i32, i32, i32
  }
  func.func @transform_12(%arg0: i32, %arg1: i32) -> (i32, i32, i32) {
    %c0_i32 = arith.constant 0 : i32
    %c0_i32_0 = arith.constant 0 : i32
    %c0_i32_1 = arith.constant 0 : i32
    return %arg1, %c0_i32, %c0_i32_0 : i32, i32, i32
  }
  func.func @transform_13(%arg0: i32, %arg1: i32) -> (i32, i32, i32) {
    %c0_i32 = arith.constant 0 : i32
    %c0_i32_0 = arith.constant 0 : i32
    %c0_i32_1 = arith.constant 0 : i32
    return %arg0, %c0_i32, %c0_i32_0 : i32, i32, i32
  }
}

</mosaic_0001>

<bundles_post_ra>
// kernel: tpu_custom_call.1
= control target key start
LH: loop header
LB: loop body
LE: loop exit
PB: predicated region body
PF: predicated region fallthrough
CT: control target
= control target key end

     0   :  { %s5000_s0 = inlined_call_operand.vmem [shape: f32[2,8,32], index: 0, kind: input, shape index: {}]   ;;  %s5001_s1 = inlined_call_operand.vmem [shape: bf16[2,32,96], index: 1, kind: input, shape index: {}]   ;;  %s5002_s2 = inlined_call_operand.vmem [shape: f32[2,1,96], index: 2, kind: input, shape index: {}]   ;;  %s5003_s3 = inlined_call_operand.vmem [shape: bf16[2,32,32], index: 3, kind: input, shape index: {}]   ;;  %s5004_s4 = inlined_call_operand.vmem [shape: f32[2,1,32], index: 4, kind: input, shape index: {}]   ;;  %s5005_s5 = inlined_call_operand.vmem [shape: bf16[2,32,2048], index: 5, kind: input, shape index: {}]   ;;  %s5006_s6 = inlined_call_operand.vmem [shape: f32[2,1,2048], index: 6, kind: input, shape index: {}]   ;;  %s5007_s7 = inlined_call_operand.vmem [shape: bf16[2,2048,32], index: 7, kind: input, shape index: {}]   ;;  %s5008_s8 = inlined_call_operand.vmem [shape: f32[2,1,32], index: 8, kind: input, shape index: {}]   ;;  %s5009_s9 = inlined_call_operand.vmem [shape: f32[2,1,32], index: 9, kind: input, shape index: {}]   ;;  %s5010_s10 = inlined_call_operand.vmem [shape: f32[2,1,32], index: 10, kind: input, shape index: {}]   ;;  %s5011_s11 = inlined_call_operand.vmem [shape: f32[2,1,32], index: 11, kind: input, shape index: {}]   ;;  %s5012_s12 = inlined_call_operand.vmem [shape: f32[2,1,32], index: 12, kind: input, shape index: {}]   ;;  %s5013_s13 = inlined_call_operand.hbm [shape: f32[2,8,32], index: 13, kind: output, shape index: {}]  }
   0x1   :  { %5029 = sst [smem:[#allocation18_spill]] %s5000_s0 }
   0x2   :  { %5030 = sst [smem:[#allocation19_spill]] %s5001_s1 }
   0x3   :  { %5031 = sst [smem:[#allocation20_spill]] %s5003_s3 }
   0x4   :  { %5032 = sst [smem:[#allocation21_spill]] %s5005_s5 }
   0x5   :  { %5033 = sst [smem:[#allocation22_spill]] %s5006_s6 }
   0x6   :  { %5034 = sst [smem:[#allocation23_spill]] %s5007_s7 }
   0x7   :  { %5035 = sst [smem:[#allocation24_spill]] %s5012_s12 }
   0x8   :  { %5036 = sst [smem:[#allocation25_spill]] %s5013_s13 }
   0x9   :  { %18 = vsyncpa [#allocation3], 0 }
   0xa   :  { %20 = vsyncpa [#allocation3 + $0x1], 0  ;;  %s4409_s25 = smov 0   ;;  %s4411_s26 = smov 0  }
   0xb   :  { %s4413_s27 = smov 0   ;;  %s4415_s28 = smov 0  }
   0xc   :  { %s4417_s29 = smov 0   ;;  %s4419_s30 = smov 0  }
   0xd   :  { %s4421_s14 = smov 0   ;;  %s4423_s15 = smov 0  }
   0xe LB: > { %5037 = sst [smem:[#allocation5_spill]] %s4291_s25  ;;  %s3509_s16 = sadd.s32 4294967295, %s4319_s15   ;;  %s4319_s15 = sphi %s4423_s15, %s26_s15   ;;  %s4315_s14 = sphi %s4421_s14, %s5078_s14   ;;  %s4311_s30 = sphi %s4419_s30, %s5077_s30   ;;  %s4307_s29 = sphi %s4417_s29, %s5076_s29   ;;  %s4303_s28 = sphi %s4415_s28, %s5075_s28   ;;  %s4299_s27 = sphi %s4413_s27, %s5074_s27   ;;  %s4295_s26 = sphi %s4411_s26, %s5073_s26   ;;  %s4291_s25 = sphi %s4409_s25, %s5072_s25  }
   0xf   : > { %5038 = sst [smem:[#allocation6_spill]] %s4295_s26  ;;  %s3510_s17 = sadd.s32 4294967294, %s4319_s15  }
  0x10   : > { %5039 = sst [smem:[#allocation7_spill]] %s4299_s27  ;;  %s35_s18 = sadd.s32 1, %s4311_s30 }
  0x11   : > { %5040 = sst [smem:[#allocation8_spill]] %s4303_s28  ;;  %p36_p0 = scmp.ge.s32.totalorder %s35_s18, 2 }
  0x12   : > { %5041 = sst [smem:[#allocation9_spill]] %s4307_s29  ;;  %s38_s19 = sadd.s32 1, %s4315_s14 }
  0x13   : > { %5042 = sst [smem:[#allocation10_spill]] %s4311_s30  ;;  %p393_p1 = scmp.ne.s32.totalorder %s4299_s27, %s4295_s26 }
  0x14   : > { %5043 = sst [smem:[#allocation11_spill]] %s4315_s14  ;;  %p394_p2 = scmp.eq.s32.totalorder %s3509_s16, 3 }
  0x15   : > { %5044 = sst [smem:[#allocation12_spill]] %s4319_s15  ;;  %s5080_s18 = smov (%p36_p0, %s35_s18), 0 }
  0x16   : > { %5045 = sst [smem:[#allocation13_spill]] %s5080_s18  ;;  %s5082_s19 = smov (!%p36_p0, %s38_s19), %s4315_s14 }
  0x17   : > { %p4458_p3 = por %p394_p2, %p393_p1  ;;  %p399_p4 = scmp.ne.s32.totalorder %s4295_s26, %s4291_s25 }
  0x18   : > { %p40_p5 = scmp.ge.s32.totalorder %s5082_s19, 2  ;;  %p400_p6 = scmp.eq.s32.totalorder %s3510_s17, 3 }
  0x19   : > { %s5046_s20 = scalar_select %p4458_p3, 1, 0 }
  0x1a   : > { %p3513_p7 = scmp.ge.s32.totalorder %s4319_s15, 1  ;;  %p506_p8 = scmp.lt.s32.totalorder %s4319_s15, 5 }
  0x1b   : > { %5047 = sst [smem:[#allocation14_spill]] %s5046_s20  ;;  %s5084_s19 = smov (%p40_p5, %s5082_s19), 0 }
  0x1c   : > { %5048 = sst [smem:[#allocation15_spill]] %s5084_s19  ;;  %p4468_p9 = por %p400_p6, %p399_p4 }
  0x1d   : > { %p507_p10 = pnand %p3513_p7, %p506_p8  ;;  %s380_s22 = ssub.s32 %s4315_s14, %s5084_s19 }
  0x1e   : > { %s5049_s21 = scalar_select %p4468_p9, 1, 0 }
  0x1f   : > { %s383_s23 = sadd.s32 1, %s4299_s27  ;;  %p381_p11 = scmp.eq.s32.totalorder %s380_s22, 0 }
  0x20   : > { %5050 = sst [smem:[#allocation16_spill]] %s5049_s21  ;;  %510 = sbr.rel (%p507_p10) target bundleno = 2727 (0xaa7), region = 72 }
  0x21   : > { %s4476_s24 = scalar_select %p381_p11, %s4299_s27, %s383_s23  }
  0x22   : > { %s5017_s16 = sand.u32 (!%p507_p10), 1, %s4295_s26   ;;  %p594_p12 = scmp.lt.s32.totalorder (!%p507_p10), %s4307_s29, 1 }
  0x23   : > { %5051 = sst [smem:[#allocation17_spill]] %s4476_s24  ;;  %s3514_s17 = sshll.u32 (!%p507_p10), %s5017_s16, 3 }
  0x24   : > { %p598_p13 = scmp.lt.s32.totalorder (!%p507_p10), %s4303_s28, 1  ;;  %s5052_s0 = sld [smem:[#allocation18_spill]] (!%p507_p10) }
  0x25   : > { %s5053_s1 = sld [smem:[#allocation19_spill]] (!%p507_p10)  ;;  %s5054_s3 = sld [smem:[#allocation20_spill]] (!%p507_p10) }
  0x26   : > { %s5055_s6 = sld [smem:[#allocation22_spill]] (!%p507_p10)  ;;  %s5056_s5 = sld [smem:[#allocation21_spill]] (!%p507_p10) }
  0x27   : > { %s595_s18 = scalar_select %p594_p12, %s4307_s29, 1 }
  0x28   : > { %s4485_s30 = scalar_select %p598_p13, %s4303_s28, 1 }
  0x29   : > { %s3515_s22 = sshll.u32 %s595_s18, 3  ;;  %s5057_s7 = sld [smem:[#allocation23_spill]] }
  0x2a   : > { %s597_s14 = scalar_lea.vmem %s5052_s0, %s3515_s22  ;;  %s3719_s16 = sshll.u32 %s4485_s30, 4 }
  0x2b   : > { %s602_s21 = scalar_lea.vmem %s5053_s1, %s3719_s16  ;;  %s4501_s29 = scalar_lea.vmem %s5054_s3, %s3719_s16 }
  0x2c   : > { %s3721_s23 = sshll.u32 %s4485_s30, 8  ;;  %s4511_s12 = scalar_lea.vmem %s5055_s6, %s3719_s16 }
  0x2d   : > { %s4516_s25 = scalar_lea.vmem %s5056_s5, %s3721_s23  ;;  %s3722_s15 = sshll.u32 %s4485_s30, 10 }
  0x2e   : > { %s630_s18 = scalar_lea.vmem %s5008_s8, %s4485_s30  ;;  %s633_s0 = scalar_lea.vmem %s5009_s9, %s4485_s30 }
  0x2f   : > { %s4522_s20 = scalar_lea.vmem %s5057_s7, %s3722_s15  ;;  %s636_s27 = scalar_lea.vmem %s5010_s10, %s4485_s30 }
  0x30   : > { %s639_s5 = scalar_lea.vmem %s5011_s11, %s4485_s30  ;;  %s5058_s15 = sld [smem:[#allocation24_spill]] }
  0x31   : > { %s4544_s7 = scalar_lea.vmem [#allocation2], %s3514_s17  ;;  %s5059_s1 = sld [smem:[#allocation8_spill]] }
  0x36   : > { %s642_s26 = scalar_lea.vmem %s5058_s15, %s4485_s30 }
  0x37   : > { %p3525_p0 = scmp.ne.s32.totalorder %s5059_s1, 0 }
  0x38   : > { %v648_v0 = vld [vmem:[%s597_s14] sm:$0xff] (!%p3525_p0)  ;;  %vm649_vm0 = vcmask (!%p3525_p0), 261120  }
  0x39   : > { %647 = sbr.rel (%p3525_p0) target bundleno = 64 (0x40), region = 76  ;;  %650 = vst.msk [vmem:[%s4544_s7] sm:$0xff] (!%p3525_p0), %vm649_vm0, %v648_v0 }
  0x40 PF: > { %v4073_v1 = vld [vmem:[%s602_s21] sm:$0xff]   ;;  %v4321_v2 = vmov 0.0   ;;  %v4074_v3 = vld [vmem:[%s602_s21 + $0x8] sm:$0xff]   ;;  %vm4322_vm1 = vmmov 0   ;;  %vm676_vm2 = vcmask 261120   ;;  %s5060_s14 = scalar_lea.vmem %s5002_s2, %s4485_s30  ;;  %s4323_s21 = smov 120  }
  0x41   : > { %3921 = vmatprep.subr.bf16.mxu0 %v4321_v2  ;;  %3929 = vmatprep.subr.bf16.mxu1 %v4321_v2  ;;  %v4553_v4 = vld [vmem:[%s4544_s7] sm:$0xff]  ;;  %s4324_s17 = smov 96   ;;  %s4325_s19 = smov 80   ;;  %vm724_vm3 = vcmask 64512   ;;  %vm788_vm4 = vcmask 1043456   ;;  %vm1178_vm5 = vcmask 130048  }
  0x42   : > { %3922 = vmatpush3.bf16.msra.mxu0 %v4073_v1  ;;  %3925 = vmatprep.mubr.msk.bf16.mxu0 %vm4322_vm1, %v4321_v2  ;;  %v652_v5 = vpack.c.bf16 %v4553_v4, %v4553_v4  ;;  %v3526_v6 = vld [vmem:[%s5060_s14] ss:$0 sm:$0xff]  ;;  %s4326_s28 = smov 88   ;;  %s4327_s16 = smov 72   ;;  %vm1181_vm6 = vcmask 195584  }
  0x43   : > { %3923 = vmatprep.subr.bf16.mxu0 %v4321_v2  ;;  %3931 = vmatprep.mubr.msk.bf16.mxu1 %vm4322_vm1, %v4321_v2  ;;  %s4328_s22 = smov 112   ;;  %s4329_s23 = smov 104  }
  0x44   : > { %s4330_s24 = smov 56   ;;  %s4331_s13 = smov 64  }
  0x45   : > { %s4332_s15 = smov 40   ;;  %s4333_s1 = smov 48  }
  0x46   : > { %3924 = vmatpush3.bf16.msra.mxu0 %v4074_v3  ;;  %s4334_s3 = smov 8   ;;  %s4335_s6 = smov 16  }
  0x47   : > { %3935 = vmatprep.subr.bf16.mxu0 %v4321_v2  ;;  %s4336_s14 = smov 24  }
  0x49   : > { %3926 = vmatmul.mubr.msk.bf16.vlgmr.msra.gmra.mrb[0].mxu0 %vm676_vm2, %v652_v5 }
  0x4a   : > { %3937 = vmatprep.mubr.msk.bf16.mxu0 %vm4322_vm1, %v4321_v2 }
 0x11c   : > { %v714_v7 = vpop.f32.mrb[0].mxu0 }
 0x11d   : > { %v715_v8 = vadd.f32 %v3526_v6, %v714_v7  ;;  %v3927_v9 = vpop.f32.mrb[1].mxu0 }
 0x11e   : > { %v717_v10 = vpop.f32.mrb[2].mxu0 }
 0x11f   : > { %v4569_v11 = vpack.c.bf16 %v715_v8, %v715_v8  ;;  %v3928_v12 = vpop.f32.mrb[3].mxu0 }
 0x121   : > { %833 = vrot.lane.b32.xlu1 %v4569_v11, %s4323_s21  ;;  %722 = vrot.lane.b32.xlu0 %v4569_v11, %s4324_s17  ;;  %s5061_s17 = scalar_lea.vmem %s5004_s4, %s4485_s30 }
 0x125   : > { %946 = vrot.lane.b32.xlu1 %v4569_v11, %s4325_s19  ;;  %835 = vrot.lane.b32.xlu0 %v4569_v11, %s4326_s28 }
 0x129   : > { %1057 = vrot.lane.b32.xlu1 %v4569_v11, %s4327_s16  ;;  %944 = vrot.lane.b32.xlu0 %v4569_v11, %s4328_s22 }
 0x12d   : > { %1055 = vrot.lane.b32.xlu0 %v4569_v11, %s4329_s23 }
 0x193   : > { %v723_v13 = vpop.permute.xlu0 %722  ;;  %v834_v16 = vpop.permute.xlu1 %833 }
 0x194   : > { %v729_v14 = vsel %vm724_vm3, %v723_v13, 0 }
 0x195   : > { %3930 = vmatpush3.bf16.xpose.msra.mxu1 %v729_v14 }
 0x196   : > { %3941 = vmatprep.subr.bf16.mxu1 %v4321_v2 }
 0x197   : > { %v836_v15 = vpop.permute.xlu0 %835  ;;  %v947_v18 = vpop.permute.xlu1 %946 }
 0x198   : > { %v841_v17 = vsel %vm724_vm3, %v836_v15, 0  ;;  %v952_v19 = vsel %vm724_vm3, %v947_v18, 0 }
 0x19b   : > { %v1058_v20 = vpop.permute.xlu1 %1057  ;;  %v945_v21 = vpop.permute.xlu0 %944 }
 0x19c   : > { %3932 = vmatmul.mubr.msk.bf16.vlgmr.msra.gmra.mrb[0].mxu1 %vm724_vm3, %v4569_v11  ;;  %v1063_v22 = vsel %vm724_vm3, %v1058_v20, 0 }
 0x19d   : > { %3942 = vmatpush3.bf16.xpose.msra.mxu1 %v841_v17  ;;  %3943 = vmatprep.mubr.msk.bf16.mxu1 %vm4322_vm1, %v4321_v2 }
 0x19e   : > { %3953 = vmatprep.subr.bf16.mxu1 %v4321_v2 }
 0x19f   : > { %v1056_v23 = vpop.permute.xlu0 %1055 }
 0x1a4   : > { %3944 = vmatmul.mubr.msk.bf16.vlgmr.msra.gmra.mrb[4].mxu1 %vm724_vm3, %v834_v16 }
 0x1a5   : > { %3954 = vmatpush3.bf16.xpose.msra.mxu1 %v952_v19  ;;  %3955 = vmatprep.mubr.msk.bf16.mxu1 %vm4322_vm1, %v4321_v2 }
 0x1a6   : > { %3965 = vmatprep.subr.bf16.mxu1 %v4321_v2 }
 0x1ac   : > { %3956 = vmatmul.mubr.msk.bf16.vlgmr.msra.gmra.mrb[8].mxu1 %vm724_vm3, %v945_v21 }
 0x1ad   : > { %3966 = vmatpush3.bf16.xpose.msra.mxu1 %v1063_v22  ;;  %3967 = vmatprep.mubr.msk.bf16.mxu1 %vm4322_vm1, %v4321_v2 }
 0x1ae   : > { %3977 = vmatprep.subr.bf16.mxu1 %v4321_v2 }
 0x1b4   : > { %3968 = vmatmul.mubr.msk.bf16.vlgmr.msra.gmra.mrb[12].mxu1 %vm724_vm3, %v1056_v23 }
 0x1b5   : > { %3981 = vmatprep.mubr.msk.bf16.mxu1 %vm4322_vm1, %v4321_v2 }
 0x26f   : > { %v765_v24 = vpop.f32.mrb[0].mxu1 }
 0x270   : > { %v3933_v25 = vpop.f32.mrb[1].mxu1  ;;  %v771_v26 = vsel %vm724_vm3, %v765_v24, -inf }
 0x271   : > { %772 = vmax.xlane.f32.xlu1 %v771_v26  ;;  %v768_v27 = vpop.f32.mrb[2].mxu1 }
 0x272   : > { %v3934_v28 = vpop.f32.mrb[3].mxu1 }
 0x277   : > { %v877_v29 = vpop.f32.mrb[4].mxu1 }
 0x278   : > { %v3945_v30 = vpop.f32.mrb[5].mxu1  ;;  %v883_v31 = vsel %vm724_vm3, %v877_v29, -inf }
 0x279   : > { %884 = vmax.xlane.f32.xlu0 %v883_v31  ;;  %v880_v32 = vpop.f32.mrb[6].mxu1 }
 0x27a   : > { %v3946_v33 = vpop.f32.mrb[7].mxu1 }
 0x27f   : > { %v988_v34 = vpop.f32.mrb[8].mxu1 }
 0x280   : > { %v3957_v35 = vpop.f32.mrb[9].mxu1  ;;  %v994_v36 = vsel %vm724_vm3, %v988_v34, -inf }
 0x281   : > { %995 = vmax.xlane.f32.xlu0 %v994_v36  ;;  %v991_v37 = vpop.f32.mrb[10].mxu1  ;;  %v4075_v35 = vld [vmem:[%s4501_s29] sm:$0xff]   ;;  %v4076_v36 = vld [vmem:[%s4501_s29 + $0x8] sm:$0xff]   ;;  %s5066_s29 = sld [smem:[#allocation25_spill]] }
 0x282   : > { %v3958_v38 = vpop.f32.mrb[11].mxu1  ;;  %3978 = vmatpush3.bf16.msra.mxu1 %v4075_v35 }
 0x283   : > { %3979 = vmatprep.subr.bf16.mxu1 %v4321_v2 }
 0x286   : > { %3980 = vmatpush3.bf16.msra.mxu1 %v4076_v36  ;;  %v1299_v36 = vld [vmem:[%s4516_s25 + $0x90] sm:$0xff] }
 0x287   : > { %v1099_v39 = vpop.f32.mrb[12].mxu1  ;;  %s5067_s21 = smov %s5066_s29 }
 0x288   : > { %v3969_v40 = vpop.f32.mrb[13].mxu1  ;;  %v1105_v41 = vsel %vm724_vm3, %v1099_v39, -inf }
 0x289   : > { %1106 = vmax.xlane.f32.xlu1 %v1105_v41  ;;  %v1102_v42 = vpop.f32.mrb[14].mxu1 }
 0x28a   : > { %v3970_v43 = vpop.f32.mrb[15].mxu1 }
 0x2fe   : > { %v773_v44 = vpop.xlane.xlu1 %772 }
 0x2ff   : > { %v774_v45 = vsub.f32 %v765_v24, %v773_v44 }
 0x301   : > { %v775_v46 = vmul.f32 1.442695, %v774_v45 }
 0x303   : > { %4205 = vpow2.f32 %v775_v46 }
 0x306   : > { %v885_v47 = vpop.xlane.xlu0 %884 }
 0x307   : > { %v886_v48 = vsub.f32 %v877_v29, %v885_v47 }
 0x309   : > { %v887_v49 = vmul.f32 1.442695, %v886_v48 }
 0x30b   : > { %4207 = vpow2.f32 %v887_v49 }
 0x30d   : > { %v4206_v50 = vpop.eup %4205 }
 0x30e   : > { %v996_v51 = vpop.xlane.xlu0 %995  ;;  %v777_v52 = vsel %vm724_vm3, %v4206_v50, 0.0 }
 0x30f   : > { %v997_v53 = vsub.f32 %v988_v34, %v996_v51  ;;  %778 = vadd.xlane.f32.xlu0 %v777_v52 }
 0x311   : > { %v998_v54 = vmul.f32 1.442695, %v997_v53  ;;  %v3538_v53 = vld [vmem:[%s5061_s17] ss:$0 sm:$0xff] }
 0x313   : > { %4209 = vpow2.f32 %v998_v54 }
 0x315   : > { %v4208_v55 = vpop.eup %4207 }
 0x316   : > { %v889_v56 = vsel %vm724_vm3, %v4208_v55, 0.0  ;;  %v1107_v59 = vpop.xlane.xlu1 %1106 }
 0x317   : > { %890 = vadd.xlane.f32.xlu1 %v889_v56  ;;  %v1108_v60 = vsub.f32 %v1099_v39, %v1107_v59 }
 0x319   : > { %v1109_v61 = vmul.f32 1.442695, %v1108_v60 }
 0x31b   : > { %4211 = vpow2.f32 %v1109_v61 }
 0x31d   : > { %v4210_v57 = vpop.eup %4209 }
 0x31e   : > { %v1000_v58 = vsel %vm724_vm3, %v4210_v57, 0.0 }
 0x31f   : > { %1001 = vadd.xlane.f32.xlu0 %v1000_v58 }
 0x325   : > { %v4212_v62 = vpop.eup %4211 }
 0x326   : > { %v1111_v63 = vsel %vm724_vm3, %v4212_v62, 0.0 }
 0x328   : > { %895 = vrot.lane.b32.xlu1 %v4569_v11, %s4330_s24 }
 0x335   : > { %783 = vrot.lane.b32.xlu0 %v4569_v11, %s4331_s13 }
 0x339   : > { %1117 = vrot.lane.b32.xlu0 %v4569_v11, %s4332_s15 }
 0x34c   : > { %1112 = vadd.xlane.f32.xlu1 %v1111_v63 }
 0x35d   : > { %1006 = vrot.lane.b32.xlu1 %v4569_v11, %s4333_s1 }
 0x39c   : > { %v779_v0 = vpop.xlane.xlu0 %778 }
 0x39d   : > { %4213 = vrcp.f32 %v779_v0 }
 0x3a4   : > { %v891_v1 = vpop.xlane.xlu1 %890 }
 0x3a5   : > { %4215 = vrcp.f32 %v891_v1 }
 0x3a7   : > { %v4214_v3 = vpop.eup %4213 }
 0x3a8   : > { %v781_v6 = vmul.f32 %v4214_v3, %v4206_v50  ;;  %v896_v9 = vpop.permute.xlu1 %895  ;;  %v1281_v3 = vld [vmem:[%s4516_s25] sm:$0xff] }
 0x3a9   : > { %v901_v13 = vsel %vm788_vm4, %v896_v9, 0 }
 0x3aa   : > { %v782_v10 = vpack.c.bf16 %v781_v6, %v781_v6  ;;  %v1282_v6 = vld [vmem:[%s4516_s25 + $0x8] sm:$0xff] }
 0x3ac   : > { %v1002_v5 = vpop.xlane.xlu0 %1001 }
 0x3ad   : > { %4217 = vrcp.f32 %v1002_v5  ;;  %v1289_v5 = vld [vmem:[%s4516_s25 + $0x40] sm:$0xff] }
 0x3af   : > { %v4216_v12 = vpop.eup %4215 }
 0x3b0   : > { %v784_v7 = vpop.permute.xlu0 %783  ;;  %v893_v11 = vmul.f32 %v4216_v12, %v4208_v55  ;;  %v1297_v12 = vld [vmem:[%s4516_s25 + $0x80] sm:$0xff] }
 0x3b1   : > { %v790_v8 = vsel %vm788_vm4, %v784_v7, 0  ;;  %v3545_v7 = vcombine.high %v1281_v3, %v1289_v5 }
 0x3b2   : > { %3936 = vmatpush3.bf16.msra.mxu0 %v790_v8  ;;  %v894_v14 = vpack.c.bf16 %v893_v11, %v893_v11  ;;  %v1290_v8 = vld [vmem:[%s4516_s25 + $0x48] sm:$0xff] }
 0x3b3   : > { %3947 = vmatprep.subr.bf16.mxu0 %v4321_v2  ;;  %v3546_v9 = vcombine.low %v1282_v6, %v1290_v8  ;;  %v1298_v11 = vld [vmem:[%s4516_s25 + $0x88] sm:$0xff] }
 0x3b4   : > { %v1118_v20 = vpop.permute.xlu0 %1117 }
 0x3b5   : > { %3938 = vmatmul.mubr.msk.bf16.vlgmr.msra.gmra.mrb[4].mxu0 %vm724_vm3, %v782_v10  ;;  %v1123_v22 = vsel %vm788_vm4, %v1118_v20, 0  ;;  %v3547_v10 = vcombine.high %v1282_v6, %v1290_v8  ;;  %v1291_v20 = vld [vmem:[%s4516_s25 + $0x50] sm:$0xff]  ;;  %v1312_v8 = vld [vmem:[%s4516_s25 + $0xf8] sm:$0xff] }
 0x3b6   : > { %3948 = vmatpush3.bf16.msra.mxu0 %v901_v13  ;;  %3949 = vmatprep.mubr.msk.bf16.mxu0 %vm4322_vm1, %v4321_v2  ;;  %v1305_v13 = vld [vmem:[%s4516_s25 + $0xc0] sm:$0xff]  ;;  %v1311_v6 = vld [vmem:[%s4516_s25 + $0xf0] sm:$0xff] }
 0x3b7   : > { %3959 = vmatprep.subr.bf16.mxu0 %v4321_v2  ;;  %v4218_v15 = vpop.eup %4217  ;;  %1601 = vmatprep.subr.bf16.mxu1 %v3547_v10 }
 0x3b8   : > { %v1004_v17 = vmul.f32 %v4218_v15, %v4210_v57  ;;  %v1306_v15 = vld [vmem:[%s4516_s25 + $0xc8] sm:$0xff] }
 0x3ba   : > { %v1005_v21 = vpack.c.bf16 %v1004_v17, %v1004_v17  ;;  %v3562_v17 = vcombine.low %v1298_v11, %v1306_v15 }
 0x3bd   : > { %3950 = vmatmul.mubr.msk.bf16.vlgmr.msra.gmra.mrb[8].mxu0 %vm724_vm3, %v894_v14  ;;  %v3561_v14 = vcombine.high %v1297_v12, %v1305_v13 }
 0x3be   : > { %3961 = vmatprep.mubr.msk.bf16.mxu0 %vm4322_vm1, %v4321_v2 }
 0x3d9   : > { %v1113_v16 = vpop.xlane.xlu1 %1112 }
 0x3da   : > { %4219 = vrcp.f32 %v1113_v16  ;;  %v3560_v16 = vcombine.low %v1297_v12, %v1305_v13 }
 0x3dd   : > { %v1007_v18 = vpop.permute.xlu1 %1006 }
 0x3de   : > { %v1012_v19 = vsel %vm788_vm4, %v1007_v18, 0  ;;  %v3563_v18 = vcombine.high %v1298_v11, %v1306_v15  ;;  %v4078_v15 = vld [vmem:[%s4522_s20 + $0xc0] sm:$0xff]  }
 0x3df   : > { %3960 = vmatpush3.bf16.msra.mxu0 %v1012_v19  ;;  %v1283_v19 = vld [vmem:[%s4516_s25 + $0x10] sm:$0xff] }
 0x3e0   : > { %3971 = vmatprep.subr.bf16.mxu0 %v4321_v2 }
 0x3e2   : > { %3962 = vmatmul.mubr.msk.bf16.vlgmr.msra.gmra.mrb[12].mxu0 %vm724_vm3, %v1005_v21  ;;  %v1284_v21 = vld [vmem:[%s4516_s25 + $0x18] sm:$0xff] }
 0x3e3   : > { %3972 = vmatpush3.bf16.msra.mxu0 %v1123_v22  ;;  %3973 = vmatprep.mubr.msk.bf16.mxu0 %vm4322_vm1, %v4321_v2  ;;  %v3549_v22 = vcombine.high %v1283_v19, %v1291_v20 }
 0x3e4   : > { %v4220_v23 = vpop.eup %4219  ;;  %1560 = vmatprep.subr.bf16.mxu0 %v3545_v7  ;;  %v1304_v7 = vld [vmem:[%s4516_s25 + $0xb8] sm:$0xff] }
 0x3e5   : > { %v1115_v24 = vmul.f32 %v4220_v23, %v4212_v62  ;;  %v1292_v23 = vld [vmem:[%s4516_s25 + $0x58] sm:$0xff]  ;;  %v3575_v12 = vcombine.high %v1304_v7, %v1312_v8  ;;  %v3574_v11 = vcombine.low %v1304_v7, %v1312_v8 }
 0x3e7   : > { %v1116_v25 = vpack.c.bf16 %v1115_v24, %v1115_v24  ;;  %v4337_v24 = vmov 0  }
 0x3ea   : > { %3974 = vmatmul.mubr.msk.bf16.vlgmr.msra.gmra.mrb[16].mxu0 %vm724_vm3, %v1116_v25  ;;  %v3548_v25 = vcombine.low %v1283_v19, %v1291_v20  ;;  %v4082_v19 = vld [vmem:[%s4522_s20 + $0xc8] sm:$0xff]  }
 0x3eb   : > { %1592 = vmatprep.mubr.bf16.mxu0 %v4337_v24  ;;  %v4083_v20 = vld [vmem:[%s4522_s20 + $0x8] sm:$0xff]  }
 0x488   : > { %v826_v26 = vpop.f32.mrb[4].mxu0 }
 0x489   : > { %v3939_v27 = vpop.f32.mrb[5].mxu0  ;;  %v832_v48 = vpack.c.bf16 %v826_v26, %v826_v26  ;;  %v3550_v26 = vcombine.low %v1284_v21, %v1292_v23 }
 0x48a   : > { %v829_v28 = vpop.f32.mrb[6].mxu0  ;;  %v3551_v27 = vcombine.high %v1284_v21, %v1292_v23  ;;  %v4084_v21 = vld [vmem:[%s4522_s20 + $0x88] sm:$0xff]   ;;  %v4086_v23 = vld [vmem:[%s4522_s20 + $0xd0] sm:$0xff]  }
 0x48b   : > { %v3940_v29 = vpop.f32.mrb[7].mxu0 }
 0x490   : > { %v937_v30 = vpop.f32.mrb[8].mxu0 }
 0x491   : > { %v943_v31 = vpack.c.bf16 %v937_v30, %v937_v30  ;;  %v3951_v32 = vpop.f32.mrb[9].mxu0 }
 0x492   : > { %v940_v33 = vpop.f32.mrb[10].mxu0  ;;  %v3542_v32 = vld [vmem:[%s633_s0] ss:$0 sm:$0xff] }
 0x493   : > { %1167 = vrot.lane.b32.xlu1 %v943_v31, %s4334_s3  ;;  %v3952_v34 = vpop.f32.mrb[11].mxu0  ;;  %s3316_s3 = sshll.u32 %s4544_s7, 4  ;;  %s4945_s3 = int_to_ptr.vmem [resolvable:$true] %s3316_s3 }
 0x494   : > { %v3543_v34 = vld [vmem:[%s636_s27] ss:$0 sm:$0xff]  ;;  %s4225_s30 = scalar_lea.vmem %s4945_s3, 128 }
 0x495   : > { %p4226_p1 = scmp.ne.s32.totalorder %s4945_s3, %s4225_s30 }
 0x497   : > { %p4227_p2 = pnand %p4226_p1, %p4458_p3 }
 0x499   : > { %p4228_p4 = pneg %p4227_p2 }
 0x4b5   : > { %v1048_v37 = vpop.f32.mrb[12].mxu0 }
 0x4b6   : > { %v1054_v38 = vpack.c.bf16 %v1048_v37, %v1048_v37  ;;  %v3963_v39 = vpop.f32.mrb[13].mxu0  ;;  %v1307_v37 = vld [vmem:[%s4516_s25 + $0xd0] sm:$0xff] }
 0x4b7   : > { %v1051_v40 = vpop.f32.mrb[14].mxu0  ;;  %v1308_v39 = vld [vmem:[%s4516_s25 + $0xd8] sm:$0xff] }
 0x4b8   : > { %1170 = vrot.lane.b32.xlu0 %v1054_v38, %s4335_s6  ;;  %v3964_v41 = vpop.f32.mrb[15].mxu0  ;;  %v1300_v38 = vld [vmem:[%s4516_s25 + $0x98] sm:$0xff] }
 0x4bd   : > { %v1159_v42 = vpop.f32.mrb[16].mxu0 }
 0x4be   : > { %v1165_v43 = vpack.c.bf16 %v1159_v42, %v1159_v42  ;;  %v3975_v44 = vpop.f32.mrb[17].mxu0  ;;  %v3565_v42 = vcombine.high %v1299_v36, %v1307_v37 }
 0x4bf   : > { %v1162_v45 = vpop.f32.mrb[18].mxu0  ;;  %v1285_v44 = vld [vmem:[%s4516_s25 + $0x20] sm:$0xff] }
 0x4c0   : > { %1173 = vrot.lane.b32.xlu1 %v1165_v43, %s4336_s14  ;;  %v3976_v46 = vpop.f32.mrb[19].mxu0  ;;  %v3567_v43 = vcombine.high %v1300_v38, %v1308_v39  ;;  %v1293_v45 = vld [vmem:[%s4516_s25 + $0x60] sm:$0xff] }
 0x4c1   : > { %v1286_v46 = vld [vmem:[%s4516_s25 + $0x28] sm:$0xff] }
 0x505   : > { %v1168_v47 = vpop.permute.xlu1 %1167 }
 0x506   : > { %v1177_v49 = vsel %vm724_vm3, %v832_v48, %v1168_v47  ;;  %v1294_v47 = vld [vmem:[%s4516_s25 + $0x68] sm:$0xff]  ;;  %v3564_v48 = vcombine.low %v1299_v36, %v1307_v37 }
 0x507   : > { %v4099_v36 = vld [vmem:[%s4522_s20 + $0x28] sm:$0xff]  }
 0x508   : > { %v4100_v37 = vld [vmem:[%s4522_s20 + $0xa8] sm:$0xff]  }
 0x52a   : > { %v1171_v2 = vpop.permute.xlu0 %1170 }
 0x52b   : > { %v1180_v50 = vsel %vm1178_vm5, %v1177_v49, %v1171_v2  ;;  %v3566_v2 = vcombine.low %v1300_v38, %v1308_v39  ;;  %v3553_v49 = vcombine.high %v1285_v44, %v1293_v45  ;;  %v4101_v38 = vld [vmem:[%s4522_s20 + $0x70] sm:$0xff]  }
 0x52c   : > { %v4102_v39 = vld [vmem:[%s4522_s20 + $0xf0] sm:$0xff]  }
 0x532   : > { %v1174_v51 = vpop.permute.xlu1 %1173 }
 0x533   : > { %v1183_v52 = vsel %vm1181_vm6, %v1180_v50, %v1174_v51  ;;  %v3555_v50 = vcombine.high %v1286_v46, %v1294_v47  ;;  %v1301_v51 = vld [vmem:[%s4516_s25 + $0xa0] sm:$0xff] }
 0x534   : > { %3982 = vmatmul.mubr.msk.bf16.vlgmr.msra.gmra.mrb[16].mxu1 %vm676_vm2, %v1183_v52  ;;  %v1309_v52 = vld [vmem:[%s4516_s25 + $0xe0] sm:$0xff] }
 0x535   : > { %1602 = vmatpush1.bf16.msra.mxu1 %v3546_v9  ;;  %1633 = vmatprep.mubr.bf16.mxu1 %v4337_v24 }
 0x536   : > { %1603 = vmatprep.subr.bf16.mxu1 %v3563_v18  ;;  %v4081_v18 = vld [vmem:[%s4522_s20 + $0x48] sm:$0xff]  }
 0x539   : > { %1604 = vmatpush1.bf16.msra.mxu1 %v3562_v17  ;;  %v4080_v17 = vld [vmem:[%s4522_s20 + $0x80] sm:$0xff]  }
 0x53a   : > { %1683 = vmatprep.subr.bf16.mxu1 %v3551_v27  ;;  %v4090_v27 = vld [vmem:[%s4522_s20 + $0xd8] sm:$0xff]  }
 0x607   : > { %v1243_v54 = vpop.f32.mrb[16].mxu1 }
 0x608   : > { %v1244_v55 = vadd.f32 %v3538_v53, %v1243_v54  ;;  %v3983_v56 = vpop.f32.mrb[17].mxu1  ;;  %v1302_v53 = vld [vmem:[%s4516_s25 + $0xa8] sm:$0xff] }
 0x609   : > { %v1246_v57 = vpop.f32.mrb[18].mxu1  ;;  %v1310_v54 = vld [vmem:[%s4516_s25 + $0xe8] sm:$0xff]  ;;  %v3554_v56 = vcombine.low %v1286_v46, %v1294_v47  ;;  %v4108_v46 = vld [vmem:[%s4522_s20 + $0xb8] sm:$0xff]   ;;  %v4109_v47 = vld [vmem:[%s4522_s20 + $0x140] sm:$0xff]  }
 0x60a   : > { %v3984_v58 = vpop.f32.mrb[19].mxu1  ;;  %v1249_v59 = vadd.f32 %v1244_v55, %v4553_v4  ;;  %v3544_v4 = vcombine.low %v1281_v3, %v1289_v5  ;;  %v3552_v55 = vcombine.low %v1285_v44, %v1293_v45  ;;  %v3569_v57 = vcombine.high %v1301_v51, %v1309_v52  ;;  %v1303_v5 = vld [vmem:[%s4516_s25 + $0xb0] sm:$0xff]  ;;  %v4106_v44 = vld [vmem:[%s4522_s20 + $0xf8] sm:$0xff]  }
 0x60b   : > { %v3571_v58 = vcombine.high %v1302_v53, %v1310_v54  ;;  %v3573_v10 = vcombine.high %v1303_v5, %v1311_v6  ;;  %v3572_v13 = vcombine.low %v1303_v5, %v1311_v6  ;;  %v4107_v45 = vld [vmem:[%s4522_s20 + $0x38] sm:$0xff]  }
 0x60c   : > { %v1252_v60 = vsel %vm676_vm2, %v1249_v59, 0.0  ;;  %1561 = vmatpush1.bf16.msra.mxu0 %v3544_v4 }
 0x60d   : > { %1253 = vadd.xlane.f32.xlu0 %v1252_v60  ;;  %1562 = vmatprep.subr.bf16.mxu0 %v3561_v14  ;;  %v1295_v60 = vld [vmem:[%s4516_s25 + $0x70] sm:$0xff]  ;;  %v4077_v14 = vld [vmem:[%s4522_s20 + $0x40] sm:$0xff]  }
 0x610   : > { %1563 = vmatpush1.bf16.msra.mxu0 %v3560_v16  ;;  %v4079_v16 = vld [vmem:[%s4522_s20] sm:$0xff]  }
 0x611   : > { %1642 = vmatprep.subr.bf16.mxu0 %v3549_v22  ;;  %v4085_v22 = vld [vmem:[%s4522_s20 + $0x50] sm:$0xff]  }
 0x69a   : > { %v1254_v61 = vpop.xlane.xlu0 %1253 }
 0x69b   : > { %v1256_v62 = vmul.f32 0.03125, %v1254_v61  ;;  %v1288_v61 = vld [vmem:[%s4516_s25 + $0x38] sm:$0xff] }
 0x69d   : > { %v1257_v63 = vsub.f32 %v1249_v59, %v1256_v62  ;;  %v1287_v59 = vld [vmem:[%s4516_s25 + $0x30] sm:$0xff]  ;;  %v1296_v62 = vld [vmem:[%s4516_s25 + $0x78] sm:$0xff] }
 0x69e   : > { %v3559_v3 = vcombine.high %v1288_v61, %v1296_v62  ;;  %v3556_v4 = vcombine.low %v1287_v59, %v1295_v60  ;;  %v3558_v9 = vcombine.low %v1288_v61, %v1296_v62 }
 0x69f   : > { %v1258_v0 = vmul.f32 %v1257_v63, %v1257_v63 }
 0x6a1   : > { %v1259_v1 = vsel %vm676_vm2, %v1258_v0, 0.0  ;;  %v3570_v0 = vcombine.low %v1302_v53, %v1310_v54 }
 0x6a2   : > { %1260 = vadd.xlane.f32.xlu1 %v1259_v1  ;;  %v3557_v1 = vcombine.high %v1287_v59, %v1295_v60 }
 0x72f   : > { %v1261_v28 = vpop.xlane.xlu1 %1260 }
 0x730   : > { %v1262_v29 = vmul.f32 0.03125, %v1261_v28  ;;  %v4091_v28 = vld [vmem:[%s4522_s20 + $0x18] sm:$0xff]  }
 0x732   : > { %v1263_v30 = vadd.f32 1e-05, %v1262_v29  ;;  %v4092_v29 = vld [vmem:[%s4522_s20 + $0x98] sm:$0xff]  }
 0x734   : > { %4221 = vrsqrt.f32 %v1263_v30  ;;  %v4093_v30 = vld [vmem:[%s4522_s20 + $0x60] sm:$0xff]  }
 0x73e   : > { %v4222_v31 = vpop.eup %4221 }
 0x73f   : > { %v1265_v33 = vmul.f32 %v4222_v31, %v1257_v63  ;;  %v3568_v63 = vcombine.low %v1301_v51, %v1309_v52  ;;  %v4094_v31 = vld [vmem:[%s4522_s20 + $0xe0] sm:$0xff]   ;;  %v4751_v51 = vld [vmem:[%s4511_s12 + $0x8] sm:$0xff] }
 0x741   : > { %v1272_v35 = vmul.f32 %v3542_v32, %v1265_v33  ;;  %v4095_v32 = vld [vmem:[%s4522_s20 + $0x20] sm:$0xff]  }
 0x742   : > { %v4096_v33 = vld [vmem:[%s4522_s20 + $0xa0] sm:$0xff]  }
 0x743   : > { %v4669_v40 = vadd.f32 %v3543_v34, %v1272_v35  ;;  %v4097_v34 = vld [vmem:[%s4522_s20 + $0x68] sm:$0xff]  }
 0x744   : > { %v4098_v35 = vld [vmem:[%s4522_s20 + $0xe8] sm:$0xff]  }
 0x745   : > { %v4673_v41 = vpack.c.bf16 %v4669_v40, %v4669_v40 }
 0x747   : > { %3576 = vmatmul.mubr.msk.bf16.vlgmr.msra.gmra.mrb[20].mxu0 %vm676_vm2, %v4673_v41  ;;  %3577 = vmatmul.mubr.msk.bf16.vlgmr.msra.gmra.mrb[20].mxu1 %vm676_vm2, %v4673_v41 }
 0x748   : > { %1643 = vmatpush1.bf16.msra.mxu0 %v3548_v25  ;;  %1684 = vmatpush1.bf16.msra.mxu1 %v3550_v26  ;;  %v4088_v25 = vld [vmem:[%s4522_s20 + $0x90] sm:$0xff]   ;;  %v4089_v26 = vld [vmem:[%s4522_s20 + $0x58] sm:$0xff]  }
 0x749   : > { %1644 = vmatprep.subr.bf16.mxu0 %v3565_v42  ;;  %1685 = vmatprep.subr.bf16.mxu1 %v3567_v43  ;;  %v4104_v42 = vld [vmem:[%s4522_s20 + $0xb0] sm:$0xff]   ;;  %v4105_v43 = vld [vmem:[%s4522_s20 + $0x78] sm:$0xff]  }
 0x74a   : > { %1674 = vmatprep.mubr.bf16.mxu0 %v4337_v24  ;;  %1715 = vmatprep.mubr.bf16.mxu1 %v4337_v24 }
 0x74c   : > { %1645 = vmatpush1.bf16.msra.mxu0 %v3564_v48  ;;  %1686 = vmatpush1.bf16.msra.mxu1 %v3566_v2  ;;  %v4110_v48 = vld [vmem:[%s4522_s20 + $0x1c0] sm:$0xff]   ;;  %v1317_v2 = vlaneseq }
 0x74d   : > { %1724 = vmatprep.subr.bf16.mxu0 %v3553_v49  ;;  %1765 = vmatprep.subr.bf16.mxu1 %v3555_v50 }
 0x74e   : > { %v4747_v49 = vshrl.u32 %v1317_v2, 7  ;;  %v4120_v2 = vld [vmem:[%s4522_s20 + $0x190] sm:$0xff]  }
 0x74f   : > { %3578 = vmatmul.mubr.msk.bf16.vlgmr.msra.gmra.mrb[24].mxu0 %vm676_vm2, %v4673_v41  ;;  %3579 = vmatmul.mubr.msk.bf16.vlgmr.msra.gmra.mrb[24].mxu1 %vm676_vm2, %v4673_v41 }
 0x750   : > { %1725 = vmatpush1.bf16.msra.mxu0 %v3552_v55  ;;  %1766 = vmatpush1.bf16.msra.mxu1 %v3554_v56  ;;  %v1343_v50 = vsub.s32 6, %v4747_v49  ;;  %v1319_v53 = vsub.s32 0, %v4747_v49  ;;  %v1327_v54 = vsub.s32 2, %v4747_v49  ;;  %v4761_v55 = vld [vmem:[%s4511_s12] sm:$0xff]  ;;  %v1323_v56 = vsub.s32 1, %v4747_v49 }
 0x751   : > { %1726 = vmatprep.subr.bf16.mxu0 %v3569_v57  ;;  %1767 = vmatprep.subr.bf16.mxu1 %v3571_v58  ;;  %v1331_v57 = vsub.s32 3, %v4747_v49 }
 0x752   : > { %1756 = vmatprep.mubr.bf16.mxu0 %v4337_v24  ;;  %1797 = vmatprep.mubr.bf16.mxu1 %v4337_v24  ;;  %v4756_v52 = vrot.slane %v4751_v51, %v1343_v50  ;;  %v1320_v58 = vrot.slane %v4761_v55, %v1319_v53  ;;  %v1328_v59 = vrot.slane %v4761_v55, %v1327_v54 }
 0x753   : > { %v1324_v60 = vrot.slane %v4761_v55, %v1323_v56  ;;  %v1332_v61 = vrot.slane %v4761_v55, %v1331_v57 }
 0x754   : > { %1727 = vmatpush1.bf16.msra.mxu0 %v3568_v63  ;;  %1768 = vmatpush1.bf16.msra.mxu1 %v3570_v0 }
 0x755   : > { %1806 = vmatprep.subr.bf16.mxu0 %v3557_v1  ;;  %1847 = vmatprep.subr.bf16.mxu1 %v3559_v3 }
 0x757   : > { %3580 = vmatmul.mubr.msk.bf16.vlgmr.msra.gmra.mrb[28].mxu0 %vm676_vm2, %v4673_v41  ;;  %3581 = vmatmul.mubr.msk.bf16.vlgmr.msra.gmra.mrb[28].mxu1 %vm676_vm2, %v4673_v41 }
 0x758   : > { %1807 = vmatpush1.bf16.msra.mxu0 %v3556_v4  ;;  %1848 = vmatpush1.bf16.msra.mxu1 %v3558_v9  ;;  %v1339_v9 = vsub.s32 5, %v4747_v49 }
 0x759   : > { %1808 = vmatprep.subr.bf16.mxu0 %v3573_v10  ;;  %1849 = vmatprep.subr.bf16.mxu1 %v3575_v12  ;;  %v1347_v10 = vsub.s32 7, %v4747_v49 }
 0x75a   : > { %1838 = vmatprep.mubr.bf16.mxu0 %v4337_v24  ;;  %1879 = vmatprep.mubr.bf16.mxu1 %v4337_v24  ;;  %v4087_v24 = vld [vmem:[%s4522_s20 + $0x10] sm:$0xff]  }
 0x75c   : > { %1809 = vmatpush1.bf16.msra.mxu0 %v3572_v13  ;;  %1850 = vmatpush1.bf16.msra.mxu1 %v3574_v11 }
 0x75d   : > { %3745 = vmatprep.subr.bf16.mxu0 %v4077_v14  ;;  %3767 = vmatprep.subr.bf16.mxu1 %v4078_v15 }
 0x75f   : > { %3582 = vmatmul.mubr.msk.bf16.vlgmr.msra.gmra.mrb[32].mxu0 %vm676_vm2, %v4673_v41  ;;  %3583 = vmatmul.mubr.msk.bf16.vlgmr.msra.gmra.mrb[32].mxu1 %vm676_vm2, %v4673_v41  ;;  %v4103_v41 = vld [vmem:[%s4522_s20 + $0x30] sm:$0xff]  }
 0x760   : > { %3746 = vmatpush3.bf16.msra.mxu0 %v4079_v16  ;;  %3768 = vmatpush3.bf16.msra.mxu1 %v4080_v17 }
 0x761   : > { %3747 = vmatprep.subr.bf16.mxu0 %v4081_v18  ;;  %3769 = vmatprep.subr.bf16.mxu1 %v4082_v19  ;;  %v1340_v19 = vrot.slane %v4761_v55, %v1339_v9 }
 0x764   : > { %3748 = vmatpush3.bf16.msra.mxu0 %v4083_v20  ;;  %3770 = vmatpush3.bf16.msra.mxu1 %v4084_v21  ;;  %v1348_v20 = vrot.slane %v4761_v55, %v1347_v10  ;;  %v4111_v21 = vld [vmem:[%s4522_s20 + $0x100] sm:$0xff]  }
 0x765   : > { %3749 = vmatprep.subr.bf16.mxu0 %v4085_v22  ;;  %3771 = vmatprep.subr.bf16.mxu1 %v4086_v23  ;;  %v4112_v22 = vld [vmem:[%s4522_s20 + $0x180] sm:$0xff]  }
 0x768   : > { %3750 = vmatpush3.bf16.msra.mxu0 %v4087_v24  ;;  %3772 = vmatpush3.bf16.msra.mxu1 %v4088_v25  ;;  %v4113_v25 = vld [vmem:[%s4522_s20 + $0x148] sm:$0xff]  }
 0x769   : > { %3751 = vmatprep.subr.bf16.mxu0 %v4089_v26  ;;  %3773 = vmatprep.subr.bf16.mxu1 %v4090_v27  ;;  %v4114_v26 = vld [vmem:[%s4522_s20 + $0x1c8] sm:$0xff]  }
 0x76c   : > { %3752 = vmatpush3.bf16.msra.mxu0 %v4091_v28  ;;  %3774 = vmatpush3.bf16.msra.mxu1 %v4092_v29 }
 0x76d   : > { %3753 = vmatprep.subr.bf16.mxu0 %v4093_v30  ;;  %3775 = vmatprep.subr.bf16.mxu1 %v4094_v31 }
 0x770   : > { %3754 = vmatpush3.bf16.msra.mxu0 %v4095_v32  ;;  %3776 = vmatpush3.bf16.msra.mxu1 %v4096_v33 }
 0x771   : > { %3755 = vmatprep.subr.bf16.mxu0 %v4097_v34  ;;  %3777 = vmatprep.subr.bf16.mxu1 %v4098_v35  ;;  %v4115_v35 = vld [vmem:[%s4522_s20 + $0x108] sm:$0xff]  }
 0x774   : > { %3756 = vmatpush3.bf16.msra.mxu0 %v4099_v36  ;;  %3778 = vmatpush3.bf16.msra.mxu1 %v4100_v37  ;;  %v4116_v36 = vld [vmem:[%s4522_s20 + $0x188] sm:$0xff]  }
 0x775   : > { %3757 = vmatprep.subr.bf16.mxu0 %v4101_v38  ;;  %3779 = vmatprep.subr.bf16.mxu1 %v4102_v39  ;;  %v4117_v39 = vld [vmem:[%s4522_s20 + $0x150] sm:$0xff]  }
 0x778   : > { %3758 = vmatpush3.bf16.msra.mxu0 %v4103_v41  ;;  %3780 = vmatpush3.bf16.msra.mxu1 %v4104_v42  ;;  %v4118_v41 = vld [vmem:[%s4522_s20 + $0x1d0] sm:$0xff]  }
 0x779   : > { %3759 = vmatprep.subr.bf16.mxu0 %v4105_v43  ;;  %3781 = vmatprep.subr.bf16.mxu1 %v4106_v44  ;;  %v1352_v44 = vrot.slane %v4751_v51, %v1319_v53 }
 0x77c   : > { %3760 = vmatpush3.bf16.msra.mxu0 %v4107_v45  ;;  %3782 = vmatpush3.bf16.msra.mxu1 %v4108_v46  ;;  %v1360_v45 = vrot.slane %v4751_v51, %v1327_v54 }
 0x77d   : > { %3789 = vmatprep.subr.bf16.mxu0 %v4109_v47  ;;  %3811 = vmatprep.subr.bf16.mxu1 %v4110_v48  ;;  %v4119_v48 = vld [vmem:[%s4522_s20 + $0x110] sm:$0xff]  }
 0x81a   : > { %v1594_v62 = vpop.f32.mrb[20].mxu0  ;;  %v1635_v63 = vpop.f32.mrb[20].mxu1 }
 0x81b   : > { %v1595_v0 = vadd.f32 %v1594_v62, %v1320_v58  ;;  %v1636_v1 = vadd.f32 %v1635_v63, %v1328_v59  ;;  %v1596_v3 = vpop.f32.mrb[21].mxu0  ;;  %v1637_v5 = vpop.f32.mrb[21].mxu1  ;;  %v4121_v58 = vld [vmem:[%s4522_s20 + $0x158] sm:$0xff]  }
 0x81c   : > { %v1597_v6 = vadd.f32 %v1596_v3, %v1324_v60  ;;  %v1638_v7 = vadd.f32 %v1637_v5, %v1332_v61  ;;  %v1598_v8 = vpop.f32.mrb[22].mxu0  ;;  %v1639_v4 = vpop.f32.mrb[22].mxu1  ;;  %v4122_v59 = vld [vmem:[%s4522_s20 + $0x1d8] sm:$0xff]  }
 0x81d   : > { %v1888_v12 = vmax.f32 %v1595_v0, 0.0  ;;  %v1890_v13 = vmax.f32 %v1636_v1, 0.0  ;;  %v1599_v11 = vpop.f32.mrb[23].mxu0  ;;  %v1640_v14 = vpop.f32.mrb[23].mxu1  ;;  %v4123_v3 = vld [vmem:[%s4522_s20 + $0x118] sm:$0xff]   ;;  %v4125_v4 = vld [vmem:[%s4522_s20 + $0x160] sm:$0xff]  }
 0x81e   : > { %v1889_v15 = vmax.f32 %v1597_v6, 0.0  ;;  %v1891_v16 = vmax.f32 %v1638_v7, 0.0  ;;  %v4124_v5 = vld [vmem:[%s4522_s20 + $0x198] sm:$0xff]   ;;  %v1335_v6 = vsub.s32 4, %v4747_v49  ;;  %v4127_v11 = vld [vmem:[%s4522_s20 + $0x120] sm:$0xff]  }
 0x81f   : > { %v1904_v23 = vpack.c.bf16 %v1888_v12, %v1888_v12  ;;  %v1906_v24 = vpack.c.bf16 %v1890_v13, %v1890_v13  ;;  %v4126_v12 = vld [vmem:[%s4522_s20 + $0x1e0] sm:$0xff]   ;;  %v4171_v49 = vld [vmem:[%s4522_s20 + $0x238] sm:$0xff]  }
 0x820   : > { %v1905_v17 = vpack.c.bf16 %v1889_v15, %v1889_v15  ;;  %v1907_v18 = vpack.c.bf16 %v1891_v16, %v1891_v16  ;;  %v1368_v13 = vrot.slane %v4751_v51, %v1335_v6  ;;  %v4128_v14 = vld [vmem:[%s4522_s20 + $0x1a0] sm:$0xff]   ;;  %v4129_v15 = vld [vmem:[%s4522_s20 + $0x168] sm:$0xff]  }
 0x821   : > { %v4130_v16 = vld [vmem:[%s4522_s20 + $0x1e8] sm:$0xff]  }
 0x822   : > { %v4785_v27 = vpop.f32.mrb[24].mxu0  ;;  %v4787_v28 = vpop.f32.mrb[24].mxu1  ;;  %2983 = vmatprep.mubr.bf16.mxu0 %v1905_v17  ;;  %3023 = vmatprep.mubr.bf16.mxu1 %v1907_v18 }
 0x823   : > { %v1678_v29 = vpop.f32.mrb[25].mxu0  ;;  %v1719_v30 = vpop.f32.mrb[25].mxu1  ;;  %2984 = vmatmul.mubr.bf16.vlgmr.msra.gmra.mrb[36].mxu0 %v1904_v23  ;;  %3024 = vmatmul.mubr.bf16.vlgmr.msra.gmra.mrb[36].mxu1 %v1906_v24 }
 0x824   : > { %v1679_v31 = vadd.f32 %v1678_v29, %v1340_v19  ;;  %v1720_v32 = vadd.f32 %v1719_v30, %v1348_v20  ;;  %3790 = vmatpush3.bf16.msra.mxu0 %v4111_v21  ;;  %3812 = vmatpush3.bf16.msra.mxu1 %v4112_v22  ;;  %v1680_v33 = vpop.f32.mrb[26].mxu0  ;;  %v1721_v34 = vpop.f32.mrb[26].mxu1  ;;  %v1336_v29 = vrot.slane %v4761_v55, %v1335_v6  ;;  %v4152_v6 = vld [vmem:[%s4522_s20 + $0x290] sm:$0xff]  }
 0x825   : > { %v1681_v37 = vpop.f32.mrb[27].mxu0  ;;  %v1722_v38 = vpop.f32.mrb[27].mxu1  ;;  %3791 = vmatprep.subr.bf16.mxu0 %v4113_v25  ;;  %3813 = vmatprep.subr.bf16.mxu1 %v4114_v26  ;;  %v4131_v25 = vld [vmem:[%s4522_s20 + $0x128] sm:$0xff]   ;;  %v4134_v33 = vld [vmem:[%s4522_s20 + $0x1f0] sm:$0xff]   ;;  %v1356_v34 = vrot.slane %v4751_v51, %v1323_v56  ;;  %v4138_v56 = vld [vmem:[%s4522_s20 + $0x1f8] sm:$0xff]  }
 0x826   : > { %v1893_v42 = vmax.f32 %v1679_v31, 0.0  ;;  %v1895_v43 = vmax.f32 %v1720_v32, 0.0  ;;  %v4132_v26 = vld [vmem:[%s4522_s20 + $0x1a8] sm:$0xff]   ;;  %v4133_v32 = vld [vmem:[%s4522_s20 + $0x170] sm:$0xff]   ;;  %v4137_v38 = vld [vmem:[%s4522_s20 + $0x178] sm:$0xff]  }
 0x828   : > { %v1909_v46 = vpack.c.bf16 %v1893_v42, %v1893_v42  ;;  %v1911_v47 = vpack.c.bf16 %v1895_v43, %v1895_v43  ;;  %3792 = vmatpush3.bf16.msra.mxu0 %v4115_v35  ;;  %3814 = vmatpush3.bf16.msra.mxu1 %v4116_v36  ;;  %v1364_v35 = vrot.slane %v4751_v51, %v1331_v57  ;;  %v4139_v57 = vld [vmem:[%s4522_s20 + $0x138] sm:$0xff]  }
 0x829   : > { %3793 = vmatprep.subr.bf16.mxu0 %v4117_v39  ;;  %3815 = vmatprep.subr.bf16.mxu1 %v4118_v41  ;;  %v1677_v36 = vadd.f32 %v4785_v27, %v1336_v29  ;;  %v4140_v42 = vld [vmem:[%s4522_s20 + $0x1b8] sm:$0xff]   ;;  %v4141_v27 = vld [vmem:[%s4522_s20 + $0x240] sm:$0xff]   ;;  %v1380_v29 = vrot.slane %v4751_v51, %v1347_v10 }
 0x82a   : > { %v1758_v60 = vpop.f32.mrb[28].mxu0  ;;  %v1799_v61 = vpop.f32.mrb[28].mxu1  ;;  %3063 = vmatprep.mubr.bf16.mxu0 %v1909_v46  ;;  %3103 = vmatprep.mubr.bf16.mxu1 %v1911_v47  ;;  %v4143_v47 = vld [vmem:[%s4522_s20 + $0x200] sm:$0xff]   ;;  %v4172_v10 = vld [vmem:[%s4522_s20 + $0x2b8] sm:$0xff]  }
 0x82b   : > { %v4799_v53 = vadd.f32 %v1758_v60, %v1352_v44  ;;  %v4801_v54 = vadd.f32 %v1799_v61, %v1360_v45  ;;  %v1760_v62 = vpop.f32.mrb[29].mxu0  ;;  %v1801_v63 = vpop.f32.mrb[29].mxu1  ;;  %v1892_v43 = vmax.f32 %v1677_v36, 0.0  ;;  %v4145_v60 = vld [vmem:[%s4522_s20 + $0x248] sm:$0xff]  }
 0x82c   : > { %3794 = vmatpush3.bf16.msra.mxu0 %v4119_v48  ;;  %3816 = vmatpush3.bf16.msra.mxu1 %v4120_v2  ;;  %v1762_v0 = vpop.f32.mrb[30].mxu0  ;;  %v1803_v1 = vpop.f32.mrb[30].mxu1  ;;  %v1761_v39 = vadd.f32 %v1760_v62, %v1356_v34  ;;  %v1802_v41 = vadd.f32 %v1801_v63, %v1364_v35  ;;  %v4146_v61 = vld [vmem:[%s4522_s20 + $0x2c8] sm:$0xff]   ;;  %v4173_v34 = vld [vmem:[%s4522_s20 + $0x340] sm:$0xff]  }
 0x82d   : > { %v1763_v7 = vpop.f32.mrb[31].mxu0  ;;  %v1804_v8 = vpop.f32.mrb[31].mxu1  ;;  %3795 = vmatprep.subr.bf16.mxu0 %v4121_v58  ;;  %3817 = vmatprep.subr.bf16.mxu1 %v4122_v59  ;;  %v1908_v48 = vpack.c.bf16 %v1892_v43, %v1892_v43  ;;  %v4144_v58 = vld [vmem:[%s4522_s20 + $0x280] sm:$0xff]   ;;  %v4147_v63 = vld [vmem:[%s4522_s20 + $0x208] sm:$0xff]   ;;  %v4149_v1 = vld [vmem:[%s4522_s20 + $0x250] sm:$0xff]   ;;  %v1898_v35 = vmax.f32 %v4801_v54, 0.0 }
 0x82e   : > { %v1897_v45 = vmax.f32 %v1761_v39, 0.0  ;;  %v1899_v46 = vmax.f32 %v1802_v41, 0.0  ;;  %v4148_v0 = vld [vmem:[%s4522_s20 + $0x288] sm:$0xff]   ;;  %v4153_v7 = vld [vmem:[%s4522_s20 + $0x258] sm:$0xff]   ;;  %v4182_v43 = vld [vmem:[%s4522_s20 + $0x3d0] sm:$0xff]  }
 0x82f   : > { %v4154_v8 = vld [vmem:[%s4522_s20 + $0x2d8] sm:$0xff]   ;;  %v4178_v54 = vld [vmem:[%s4522_s20 + $0x3c8] sm:$0xff]  }
 0x830   : > { %3796 = vmatpush3.bf16.msra.mxu0 %v4123_v3  ;;  %3818 = vmatpush3.bf16.msra.mxu1 %v4124_v5  ;;  %v1913_v59 = vpack.c.bf16 %v1897_v45, %v1897_v45  ;;  %v1915_v62 = vpack.c.bf16 %v1899_v46, %v1899_v46  ;;  %v4150_v3 = vld [vmem:[%s4522_s20 + $0x2d0] sm:$0xff]   ;;  %v4179_v41 = vld [vmem:[%s4522_s20 + $0x308] sm:$0xff]   ;;  %v4186_v45 = vld [vmem:[%s4522_s20 + $0x3d8] sm:$0xff]  }
 0x831   : > { %3797 = vmatprep.subr.bf16.mxu0 %v4125_v4  ;;  %3819 = vmatprep.subr.bf16.mxu1 %v4126_v12  ;;  %v4151_v5 = vld [vmem:[%s4522_s20 + $0x210] sm:$0xff]   ;;  %v4155_v4 = vld [vmem:[%s4522_s20 + $0x218] sm:$0xff]  }
 0x832   : > { %v1840_v17 = vpop.f32.mrb[32].mxu0  ;;  %v1881_v18 = vpop.f32.mrb[32].mxu1  ;;  %v4156_v12 = vld [vmem:[%s4522_s20 + $0x298] sm:$0xff]  }
 0x833   : > { %v4813_v19 = vadd.f32 %v1840_v17, %v1368_v13  ;;  %v4816_v20 = vadd.f32 %v1881_v18, %v4756_v52  ;;  %v4818_v21 = vpop.f32.mrb[33].mxu0  ;;  %v4820_v22 = vpop.f32.mrb[33].mxu1  ;;  %v1344_v52 = vrot.slane %v4761_v55, %v1343_v50  ;;  %v4135_v50 = vld [vmem:[%s4522_s20 + $0x130] sm:$0xff]   ;;  %v4157_v13 = vld [vmem:[%s4522_s20 + $0x260] sm:$0xff]   ;;  %v4162_v17 = vld [vmem:[%s4522_s20 + $0x2e8] sm:$0xff]  }
 0x834   : > { %3798 = vmatpush3.bf16.msra.mxu0 %v4127_v11  ;;  %3820 = vmatpush3.bf16.msra.mxu1 %v4128_v14  ;;  %v1844_v23 = vpop.f32.mrb[34].mxu0  ;;  %v1885_v24 = vpop.f32.mrb[34].mxu1  ;;  %v4136_v55 = vld [vmem:[%s4522_s20 + $0x1b0] sm:$0xff]   ;;  %v4158_v11 = vld [vmem:[%s4522_s20 + $0x2e0] sm:$0xff]   ;;  %v4163_v18 = vld [vmem:[%s4522_s20 + $0x228] sm:$0xff]  }
 0x835   : > { %v1845_v30 = vpop.f32.mrb[35].mxu0  ;;  %v1886_v31 = vpop.f32.mrb[35].mxu1  ;;  %3799 = vmatprep.subr.bf16.mxu0 %v4129_v15  ;;  %3821 = vmatprep.subr.bf16.mxu1 %v4130_v16  ;;  %v1718_v37 = vadd.f32 %v4787_v28, %v1344_v52  ;;  %v4142_v28 = vld [vmem:[%s4522_s20 + $0x2c0] sm:$0xff]   ;;  %v4161_v16 = vld [vmem:[%s4522_s20 + $0x268] sm:$0xff]   ;;  %v4165_v24 = vld [vmem:[%s4522_s20 + $0x270] sm:$0xff]  }
 0x836   : > { %v4159_v14 = vld [vmem:[%s4522_s20 + $0x220] sm:$0xff]   ;;  %v4164_v23 = vld [vmem:[%s4522_s20 + $0x2a8] sm:$0xff]   ;;  %v4167_v52 = vld [vmem:[%s4522_s20 + $0x230] sm:$0xff]  }
 0x837   : > { %v1894_v44 = vmax.f32 %v1718_v37, 0.0  ;;  %v4160_v15 = vld [vmem:[%s4522_s20 + $0x2a0] sm:$0xff]   ;;  %v4168_v30 = vld [vmem:[%s4522_s20 + $0x2b0] sm:$0xff]   ;;  %v4169_v31 = vld [vmem:[%s4522_s20 + $0x278] sm:$0xff]   ;;  %v1914_v37 = vpack.c.bf16 %v1898_v35, %v1898_v35 }
 0x838   : > { %3800 = vmatpush3.bf16.msra.mxu0 %v4131_v25  ;;  %3822 = vmatpush3.bf16.msra.mxu1 %v4132_v26  ;;  %v4166_v25 = vld [vmem:[%s4522_s20 + $0x2f0] sm:$0xff]   ;;  %v1372_v26 = vrot.slane %v4751_v51, %v1339_v9  ;;  %v1884_v9 = vadd.f32 %v4820_v22, %v1380_v29  ;;  %v1896_v51 = vmax.f32 %v4799_v53, 0.0  ;;  %v4176_v53 = vld [vmem:[%s4522_s20 + $0x380] sm:$0xff]   ;;  %v4187_v46 = vld [vmem:[%s4522_s20 + $0x318] sm:$0xff]  }
 0x839   : > { %3801 = vmatprep.subr.bf16.mxu0 %v4133_v32  ;;  %3823 = vmatprep.subr.bf16.mxu1 %v4134_v33  ;;  %v1910_v2 = vpack.c.bf16 %v1894_v44, %v1894_v44  ;;  %v4170_v32 = vld [vmem:[%s4522_s20 + $0x2f8] sm:$0xff]   ;;  %v4183_v44 = vld [vmem:[%s4522_s20 + $0x310] sm:$0xff]  }
 0x83a   : > { %v1843_v33 = vadd.f32 %v4818_v21, %v1372_v26  ;;  %v1903_v36 = vmax.f32 %v1884_v9, 0.0  ;;  %v4175_v21 = vld [vmem:[%s4522_s20 + $0x300] sm:$0xff]   ;;  %v1912_v22 = vpack.c.bf16 %v1896_v51, %v1896_v51 }
 0x83c   : > { %3802 = vmatpush3.bf16.msra.mxu0 %v4135_v50  ;;  %3824 = vmatpush3.bf16.msra.mxu1 %v4136_v55  ;;  %v4174_v50 = vld [vmem:[%s4522_s20 + $0x3c0] sm:$0xff]   ;;  %v1901_v55 = vmax.f32 %v1843_v33, 0.0  ;;  %v1919_v39 = vpack.c.bf16 %v1903_v36, %v1903_v36 }
 0x83d   : > { %3803 = vmatprep.subr.bf16.mxu0 %v4137_v38  ;;  %3825 = vmatprep.subr.bf16.mxu1 %v4138_v56  ;;  %v4177_v38 = vld [vmem:[%s4522_s20 + $0x348] sm:$0xff]  }
 0x83e   : > { %v1917_v56 = vpack.c.bf16 %v1901_v55, %v1901_v55 }
 0x840   : > { %3804 = vmatpush3.bf16.msra.mxu0 %v4139_v57  ;;  %3826 = vmatpush3.bf16.msra.mxu1 %v4140_v42  ;;  %v4180_v57 = vld [vmem:[%s4522_s20 + $0x388] sm:$0xff]   ;;  %v4181_v42 = vld [vmem:[%s4522_s20 + $0x350] sm:$0xff]  }
 0x841   : > { %3833 = vmatprep.subr.bf16.mxu0 %v4141_v27  ;;  %3855 = vmatprep.subr.bf16.mxu1 %v4142_v28  ;;  %v4184_v27 = vld [vmem:[%s4522_s20 + $0x390] sm:$0xff]   ;;  %v4185_v28 = vld [vmem:[%s4522_s20 + $0x358] sm:$0xff]  }
 0x843   : > { %3064 = vmatmul.mubr.bf16.vlgmr.msra.gmra.mrb[40].mxu0 %v1908_v48  ;;  %3104 = vmatmul.mubr.bf16.vlgmr.msra.gmra.mrb[40].mxu1 %v1910_v2  ;;  %v4189_v48 = vld [vmem:[%s4522_s20 + $0x360] sm:$0xff]  }
 0x844   : > { %3834 = vmatpush3.bf16.msra.mxu0 %v4143_v47  ;;  %3143 = vmatprep.mubr.bf16.mxu0 %v1913_v59  ;;  %v4188_v47 = vld [vmem:[%s4522_s20 + $0x398] sm:$0xff]   ;;  %v4190_v2 = vld [vmem:[%s4522_s20 + $0x3e0] sm:$0xff]  }
 0x845   : > { %3856 = vmatpush3.bf16.msra.mxu1 %v4144_v58  ;;  %3183 = vmatprep.mubr.bf16.mxu1 %v1915_v62  ;;  %v4191_v58 = vld [vmem:[%s4522_s20 + $0x320] sm:$0xff]   ;;  %v4195_v62 = vld [vmem:[%s4522_s20 + $0x328] sm:$0xff]  }
 0x846   : > { %3835 = vmatprep.subr.bf16.mxu0 %v4145_v60  ;;  %3857 = vmatprep.subr.bf16.mxu1 %v4146_v61  ;;  %v4192_v59 = vld [vmem:[%s4522_s20 + $0x3a0] sm:$0xff]   ;;  %v4193_v60 = vld [vmem:[%s4522_s20 + $0x368] sm:$0xff]  }
 0x847   : > { %v4194_v61 = vld [vmem:[%s4522_s20 + $0x3e8] sm:$0xff]  }
 0x848   : > { %3836 = vmatpush3.bf16.msra.mxu0 %v4147_v63  ;;  %v4196_v63 = vld [vmem:[%s4522_s20 + $0x3a8] sm:$0xff]  }
 0x849   : > { %3858 = vmatpush3.bf16.msra.mxu1 %v4148_v0  ;;  %3837 = vmatprep.subr.bf16.mxu0 %v4149_v1  ;;  %v4197_v0 = vld [vmem:[%s4522_s20 + $0x370] sm:$0xff]  }
 0x84a   : > { %3859 = vmatprep.subr.bf16.mxu1 %v4150_v3  ;;  %v4198_v1 = vld [vmem:[%s4522_s20 + $0x3f0] sm:$0xff]  }
 0x84b   : > { %v4199_v3 = vld [vmem:[%s4522_s20 + $0x330] sm:$0xff]  }
 0x84c   : > { %3838 = vmatpush3.bf16.msra.mxu0 %v4151_v5  ;;  %v4200_v5 = vld [vmem:[%s4522_s20 + $0x3b0] sm:$0xff]  }
 0x84d   : > { %3860 = vmatpush3.bf16.msra.mxu1 %v4152_v6  ;;  %3839 = vmatprep.subr.bf16.mxu0 %v4153_v7  ;;  %v4201_v6 = vld [vmem:[%s4522_s20 + $0x378] sm:$0xff]  }
 0x84e   : > { %3861 = vmatprep.subr.bf16.mxu1 %v4154_v8  ;;  %v4202_v7 = vld [vmem:[%s4522_s20 + $0x3f8] sm:$0xff]  }
 0x84f   : > { %v4203_v8 = vld [vmem:[%s4522_s20 + $0x338] sm:$0xff]  }
 0x850   : > { %3840 = vmatpush3.bf16.msra.mxu0 %v4155_v4  ;;  %v1900_v4 = vmax.f32 %v4813_v19, 0.0 }
 0x851   : > { %3862 = vmatpush3.bf16.msra.mxu1 %v4156_v12  ;;  %3841 = vmatprep.subr.bf16.mxu0 %v4157_v13  ;;  %v4204_v12 = vld [vmem:[%s4522_s20 + $0x3b8] sm:$0xff]   ;;  %v1902_v13 = vmax.f32 %v4816_v20, 0.0  ;;  %s5062_s20 = sld [smem:[#allocation9_spill]] }
 0x852   : > { %3863 = vmatprep.subr.bf16.mxu1 %v4158_v11  ;;  %v1916_v11 = vpack.c.bf16 %v1900_v4, %v1900_v4 }
 0x854   : > { %3842 = vmatpush3.bf16.msra.mxu0 %v4159_v14  ;;  %v1918_v14 = vpack.c.bf16 %v1902_v13, %v1902_v13 }
 0x855   : > { %3864 = vmatpush3.bf16.msra.mxu1 %v4160_v15  ;;  %3843 = vmatprep.subr.bf16.mxu0 %v4161_v16 }
 0x856   : > { %3865 = vmatprep.subr.bf16.mxu1 %v4162_v17  ;;  %v3584_v17 = vld [vmem:[%s630_s18] ss:$0 sm:$0xff]  ;;  %s5063_s18 = sld [smem:[#allocation6_spill]] }
 0x857   : > { %s3716_s1 = sshll.u32 %s5062_s20, 7 }
 0x858   : > { %3844 = vmatpush3.bf16.msra.mxu0 %v4163_v18  ;;  %s4943_s17 = scalar_lea.hbm %s5066_s29, %s3716_s1 }
 0x859   : > { %3866 = vmatpush3.bf16.msra.mxu1 %v4164_v23  ;;  %3845 = vmatprep.subr.bf16.mxu0 %v4165_v24 }
 0x85a   : > { %3867 = vmatprep.subr.bf16.mxu1 %v4166_v25 }
 0x85c   : > { %3846 = vmatpush3.bf16.msra.mxu0 %v4167_v52 }
 0x85d   : > { %3868 = vmatpush3.bf16.msra.mxu1 %v4168_v30  ;;  %3847 = vmatprep.subr.bf16.mxu0 %v4169_v31 }
 0x85e   : > { %3869 = vmatprep.subr.bf16.mxu1 %v4170_v32 }
 0x860   : > { %3848 = vmatpush3.bf16.msra.mxu0 %v4171_v49 }
 0x861   : > { %3870 = vmatpush3.bf16.msra.mxu1 %v4172_v10  ;;  %3877 = vmatprep.subr.bf16.mxu0 %v4173_v34 }
 0x862   : > { %3899 = vmatprep.subr.bf16.mxu1 %v4174_v50 }
 0x863   : > { %3144 = vmatmul.mubr.bf16.vlgmr.msra.gmra.mrb[44].mxu0 %v1912_v22 }
 0x864   : > { %3184 = vmatmul.mubr.bf16.vlgmr.msra.gmra.mrb[44].mxu1 %v1914_v37  ;;  %3878 = vmatpush3.bf16.msra.mxu0 %v4175_v21 }
 0x865   : > { %3223 = vmatprep.mubr.bf16.mxu0 %v1917_v56  ;;  %3900 = vmatpush3.bf16.msra.mxu1 %v4176_v53 }
 0x866   : > { %3263 = vmatprep.mubr.bf16.mxu1 %v1919_v39  ;;  %3879 = vmatprep.subr.bf16.mxu0 %v4177_v38 }
 0x867   : > { %3901 = vmatprep.subr.bf16.mxu1 %v4178_v54 }
 0x868   : > { %3880 = vmatpush3.bf16.msra.mxu0 %v4179_v41 }
 0x869   : > { %3902 = vmatpush3.bf16.msra.mxu1 %v4180_v57  ;;  %3881 = vmatprep.subr.bf16.mxu0 %v4181_v42 }
 0x86a   : > { %3903 = vmatprep.subr.bf16.mxu1 %v4182_v43 }
 0x86c   : > { %3882 = vmatpush3.bf16.msra.mxu0 %v4183_v44 }
 0x86d   : > { %3904 = vmatpush3.bf16.msra.mxu1 %v4184_v27  ;;  %3883 = vmatprep.subr.bf16.mxu0 %v4185_v28 }
 0x86e   : > { %3905 = vmatprep.subr.bf16.mxu1 %v4186_v45 }
 0x870   : > { %3884 = vmatpush3.bf16.msra.mxu0 %v4187_v46 }
 0x871   : > { %3906 = vmatpush3.bf16.msra.mxu1 %v4188_v47  ;;  %3885 = vmatprep.subr.bf16.mxu0 %v4189_v48 }
 0x872   : > { %3907 = vmatprep.subr.bf16.mxu1 %v4190_v2 }
 0x874   : > { %3886 = vmatpush3.bf16.msra.mxu0 %v4191_v58 }
 0x875   : > { %3908 = vmatpush3.bf16.msra.mxu1 %v4192_v59  ;;  %3887 = vmatprep.subr.bf16.mxu0 %v4193_v60 }
 0x876   : > { %3909 = vmatprep.subr.bf16.mxu1 %v4194_v61 }
 0x878   : > { %3888 = vmatpush3.bf16.msra.mxu0 %v4195_v62 }
 0x879   : > { %3910 = vmatpush3.bf16.msra.mxu1 %v4196_v63  ;;  %3889 = vmatprep.subr.bf16.mxu0 %v4197_v0 }
 0x87a   : > { %3911 = vmatprep.subr.bf16.mxu1 %v4198_v1 }
 0x87c   : > { %3890 = vmatpush3.bf16.msra.mxu0 %v4199_v3 }
 0x87d   : > { %3912 = vmatpush3.bf16.msra.mxu1 %v4200_v5  ;;  %3891 = vmatprep.subr.bf16.mxu0 %v4201_v6 }
 0x87e   : > { %3913 = vmatprep.subr.bf16.mxu1 %v4202_v7 }
 0x880   : > { %3892 = vmatpush3.bf16.msra.mxu0 %v4203_v8 }
 0x881   : > { %3914 = vmatpush3.bf16.msra.mxu1 %v4204_v12  ;;  %v3713_v12 = vld [vmem:[%s639_s5] ss:$0 sm:$0xff]  ;;  %s5068_s5 = sand.u32 1, %s5063_s18  }
 0x882   : > { %s3303_s19 = scalar_lea.sflag [#allocation3], %s5068_s5 }
 0x883   : > { %3224 = vmatmul.mubr.bf16.vlgmr.msra.gmra.mrb[48].mxu0 %v1916_v11  ;;  %v3714_v11 = vld [vmem:[%s642_s26] ss:$0 sm:$0xff]  ;;  %s4338_s26 = smov [#allocation2]  }
 0x884   : > { %3264 = vmatmul.mubr.bf16.vlgmr.msra.gmra.mrb[48].mxu1 %v1918_v14  ;;  %s4229_s28 = sshll.u32 %s4338_s26, 4  ;;  %s4230_s28 = int_to_ptr.vmem [resolvable:$false] %s4229_s28 }
 0x885   : > { %s4231_s16 = scalar_lea.vmem %s4230_s28, 256  ;;  %p4232_p5 = scmp.lt.s32.totalorder %s4945_s3, %s4230_s28 }
 0x886   : > { %p4233_p6 = scmp.lt.s32.totalorder %s4231_s16, %s4225_s30 }
 0x888   : > { %p4234_p7 = por %p4233_p6, %p4232_p5 }
 0x88a   : > { %p4235_p8 = pnand %p4234_p7, %p4228_p4 }
 0x8f6   : > { %v3761_v15 = vpop.f32.mrb[36].mxu0  ;;  %v3783_v16 = vpop.f32.mrb[36].mxu1 }
 0x8f7   : > { %v3762_v19 = vpop.f32.mrb[37].mxu0  ;;  %v3784_v18 = vpop.f32.mrb[37].mxu1 }
 0x8f8   : > { %v3763_v23 = vadd.f32 %v3762_v19, %v3761_v15  ;;  %v3785_v24 = vadd.f32 %v3784_v18, %v3783_v16  ;;  %v3764_v25 = vpop.f32.mrb[38].mxu0  ;;  %v3786_v20 = vpop.f32.mrb[38].mxu1 }
 0x8f9   : > { %v3765_v26 = vpop.f32.mrb[39].mxu0  ;;  %v3787_v29 = vpop.f32.mrb[39].mxu1 }
 0x8fa   : > { %v2986_v52 = vadd.f32 %v3763_v23, %v3584_v17 }
 0x8fc   : > { %v3026_v30 = vadd.f32 %v3785_v24, %v2986_v52 }
 0x916   : > { %v3805_v31 = vpop.f32.mrb[40].mxu0  ;;  %v3827_v32 = vpop.f32.mrb[40].mxu1 }
 0x917   : > { %v3806_v33 = vpop.f32.mrb[41].mxu0  ;;  %v3828_v9 = vpop.f32.mrb[41].mxu1 }
 0x918   : > { %v3807_v49 = vadd.f32 %v3806_v33, %v3805_v31  ;;  %v3829_v51 = vadd.f32 %v3828_v9, %v3827_v32  ;;  %v3808_v10 = vpop.f32.mrb[42].mxu0  ;;  %v3830_v34 = vpop.f32.mrb[42].mxu1 }
 0x919   : > { %v3809_v35 = vpop.f32.mrb[43].mxu0  ;;  %v3831_v50 = vpop.f32.mrb[43].mxu1 }
 0x91a   : > { %v3066_v55 = vadd.f32 %v3807_v49, %v3026_v30 }
 0x91c   : > { %v3106_v36 = vadd.f32 %v3829_v51, %v3066_v55 }
 0x936   : > { %v3849_v21 = vpop.f32.mrb[44].mxu0 }
 0x937   : > { %v3871_v22 = vpop.f32.mrb[44].mxu1  ;;  %v3850_v53 = vpop.f32.mrb[45].mxu0 }
 0x938   : > { %v3851_v37 = vadd.f32 %v3850_v53, %v3849_v21  ;;  %v3872_v38 = vpop.f32.mrb[45].mxu1  ;;  %v3852_v56 = vpop.f32.mrb[46].mxu0 }
 0x939   : > { %v3873_v54 = vadd.f32 %v3872_v38, %v3871_v22  ;;  %v3874_v39 = vpop.f32.mrb[46].mxu1  ;;  %v3853_v41 = vpop.f32.mrb[47].mxu0 }
 0x93a   : > { %v3146_v57 = vadd.f32 %v3851_v37, %v3106_v36  ;;  %v3875_v42 = vpop.f32.mrb[47].mxu1 }
 0x93c   : > { %v3186_v43 = vadd.f32 %v3873_v54, %v3146_v57 }
 0x956   : > { %v3893_v44 = vpop.f32.mrb[48].mxu0 }
 0x957   : > { %v3915_v27 = vpop.f32.mrb[48].mxu1  ;;  %v3894_v28 = vpop.f32.mrb[49].mxu0 }
 0x958   : > { %v3895_v45 = vadd.f32 %v3894_v28, %v3893_v44  ;;  %v3916_v46 = vpop.f32.mrb[49].mxu1  ;;  %v3896_v47 = vpop.f32.mrb[50].mxu0 }
 0x959   : > { %v3917_v48 = vadd.f32 %v3916_v46, %v3915_v27  ;;  %v3918_v2 = vpop.f32.mrb[50].mxu1  ;;  %v3897_v58 = vpop.f32.mrb[51].mxu0 }
 0x95a   : > { %v3226_v59 = vadd.f32 %v3895_v45, %v3186_v43  ;;  %v3919_v60 = vpop.f32.mrb[51].mxu1 }
 0x95c   : > { %v3266_v61 = vadd.f32 %v3917_v48, %v3226_v59 }
 0x95e   : > { %v3271_v62 = vadd.f32 %v3266_v61, %v4669_v40 }
 0x960   : > { %v3274_v63 = vsel %vm676_vm2, %v3271_v62, 0.0 }
 0x961   : > { %3275 = vadd.xlane.f32.xlu0 %v3274_v63 }
 0x9ee   : > { %v3276_v0 = vpop.xlane.xlu0 %3275 }
 0x9ef   : > { %v3277_v1 = vmul.f32 0.03125, %v3276_v0 }
 0x9f1   : > { %v3278_v3 = vsub.f32 %v3271_v62, %v3277_v1 }
 0x9f3   : > { %v3279_v5 = vmul.f32 %v3278_v3, %v3278_v3 }
 0x9f5   : > { %v3280_v6 = vsel %vm676_vm2, %v3279_v5, 0.0 }
 0x9f6   : > { %3281 = vadd.xlane.f32.xlu0 %v3280_v6 }
 0xa83   : > { %v3282_v7 = vpop.xlane.xlu0 %3281 }
 0xa84   : > { %v3283_v8 = vmul.f32 0.03125, %v3282_v7 }
 0xa86   : > { %v3284_v4 = vadd.f32 1e-05, %v3283_v8 }
 0xa88   : > { %4223 = vrsqrt.f32 %v3284_v4 }
 0xa92   : > { %v4224_v40 = vpop.eup %4223 }
 0xa93   : > { %v3286_v13 = vmul.f32 %v4224_v40, %v3278_v3 }
 0xa95   : > { %v3293_v14 = vmul.f32 %v3713_v12, %v3286_v13 }
 0xa97   : > { %v3300_v15 = vadd.f32 %v3714_v11, %v3293_v14 }
 0xa99   : > { %3301 = vst.msk [vmem:[%s4544_s7] sm:$0xff] %vm676_vm2, %v3300_v15 }
 0xa9a   : > { %4238 = shalt.err (!%p4235_p8)
}
 0xa9b   : > { %s4239_s7 = scalar_lea.hbm %s4943_s17, 128  ;;  %s4243_s25 = scalar_lea.hbm %s5067_s21, 256 }
 0xa9c   : > { %p4240_p10 = scmp.ne.s32.totalorder %s4943_s17, %s4239_s7  ;;  %p4244_p13 = scmp.lt.u32.totalorder %s4943_s17, %s5067_s21 }
 0xa9d   : > { %p4245_p0 = scmp.lt.u32.totalorder %s4243_s25, %s4239_s7  ;;  %p4247_p2 = scmp.lt.u32.totalorder %s4239_s7, %s4943_s17 }
 0xa9e   : > { %p4241_p11 = pnand %p4240_p10, %p4458_p3 }
 0xa9f   : > { %p4246_p1 = por %p4245_p0, %p4244_p13 }
 0xaa0   : > { %p4242_p12 = pneg %p4241_p11 }
 0xaa1   : > { %p4248_p4 = por %p4247_p2, %p4246_p1 }
 0xaa3   : > { %p4249_p5 = pnand %p4248_p4, %p4242_p12 }
 0xaa5   : > { %4252 = shalt.err (!%p4249_p5)
}
 0xaa6   : > { %3985 = dma.vmem_to_hbm [thread:$0]  (%p4458_p3), %s4945_s3, 128, %s4943_s17, %s3303_s19  }
 0xaa7 PF: > { %s5069_s27 = sld [smem:[#allocation12_spill]]  ;;  %s5070_s23 = sld [smem:[#allocation5_spill]] }
 0xaad   : > { %p3991_p6 = scmp.ge.s32.totalorder %s5069_s27, 2  ;;  %s3328_s13 = sand.u32 1, %s5070_s23  }
 0xaae   : > { %s3329_s15 = scalar_lea.sflag [#allocation3], %s3328_s13 }
 0xaaf   : > { %p3988_p7 = pnand %p3991_p6, %p4468_p9 }
 0xab1   : > { %4286 = dma.done.wait (!%p3988_p7), %s3329_s15, 128  }
 0xab2   : > { %4288 = vsyncadd (!%p3988_p7), %s3329_s15, 4294967168  ;;  %s26_s15 = sadd.s32 1, %s5069_s27   ;;  %s5072_s25 = sld [smem:[#allocation6_spill]] }
 0xab3   : > { %p23_p8 = scmp.ge.s32.totalorder %s26_s15, 6   ;;  %s5073_s26 = sld [smem:[#allocation7_spill]] }
 0xab4   : > { %s5074_s27 = sld [smem:[#allocation17_spill]]  ;;  %s5075_s28 = sld [smem:[#allocation10_spill]] }
 0xab5   : > { %s5076_s29 = sld [smem:[#allocation11_spill]]  ;;  %s5077_s30 = sld [smem:[#allocation13_spill]] }
 0xab6   : > { %s5078_s14 = sld [smem:[#allocation15_spill]]  ;;  %25 = sbr.rel (!%p23_p8) target bundleno = 14 (0xe), region = 147 }
 0xabd   :  { %3334 = vsyncpa [#allocation3], 1 }
 0xabe   :  { %3336 = vsyncpa [#allocation3 + $0x1], 1 }

</bundles_post_ra>
